<compile_context>
chip_gen: v6e
topology: v6e:2x2x1
jax: 0.10.0
libtpu: 0.0.40
codegen_flags: <defaults>
</compile_context>

<pallas_src>
import math

import jax
import jax.numpy as jnp
from jax.experimental import pallas as pl
from jax.experimental.pallas import tpu as pltpu

# Small stand-in sizes (original LXMERT: hid=768, obj=36, feat=2048).
HID = 32          # lxrt_encoder.dim (hid_dim)
OBJ = 8           # obj_num
FEAT = 64         # feat_size
OUT_PAD = 128     # lane-dense padded logits width (real logits = 2)


# ---------------------------------------------------------------------------
# Fused kernel: stand-in visual encoder -> per-image mean-pool -> logit_fc.
# ---------------------------------------------------------------------------
def nlvr2_fused_kernel(feat_ref, pos_ref, wf_ref, wp_ref, b_enc_ref, pool_ref,
                       w1a_ref, w1b_ref, b1_ref, g_ref, beta_ref,
                       w2_ref, b2_ref, o_ref):
    t = o_ref.shape[0]                                   # tile_b (static)

    # ---- stand-in LXRT visual encoder --------------------------------------
    # h = tanh(feat @ Wf + pos @ Wp + b) per object row (bf16 MXU, f32 acc).
    h = (jnp.dot(feat_ref[...], wf_ref[...], preferred_element_type=jnp.float32)
         + jnp.dot(pos_ref[...], wp_ref[...], preferred_element_type=jnp.float32))
    h = jnp.tanh(h + b_enc_ref[...])                     # (R, H) f32

    # ---- mean-pool over objects as ONE bf16 MXU matmul ----------------------
    # pool stacks [image-0 averaging ; image-1 averaging] -> (2T, R).
    p = jnp.dot(pool_ref[...], h.astype(jnp.bfloat16),
                preferred_element_type=jnp.float32)      # (2T, H)
    p0 = p[:t].astype(jnp.bfloat16)                      # static 8-aligned slice
    p1 = p[t:].astype(jnp.bfloat16)

    # ---- logit_fc head (exact semantics) ------------------------------------
    # Linear(2H,2H) on x = [p0 | p1]:  x @ W1 == p0 @ W1[:H] + p1 @ W1[H:]
    z = (jnp.dot(p0, w1a_ref[...], preferred_element_type=jnp.float32)
         + jnp.dot(p1, w1b_ref[...], preferred_element_type=jnp.float32)
         + b1_ref[...])                                  # (T, 2H) f32
    # exact GeLU: x * 0.5 * (1 + erf(x / sqrt(2)))
    z = z * 0.5 * (1.0 + jax.lax.erf(z * (1.0 / math.sqrt(2.0))))
    # BertLayerNorm (biased variance, eps = 1e-12), rsqrt on the EUP.
    mu = jnp.mean(z, axis=-1, keepdims=True)
    var = jnp.mean((z - mu) * (z - mu), axis=-1, keepdims=True)
    z = (z - mu) * jax.lax.rsqrt(var + 1e-12)
    z = z * g_ref[...] + beta_ref[...]
    # Linear(2H, 2) — padded to 128 lanes for unmasked stores.
    o_ref[...] = (jnp.dot(z.astype(jnp.bfloat16), w2_ref[...],
                          preferred_element_type=jnp.float32) + b2_ref[...])


# ---------------------------------------------------------------------------
# NLVR2Model.forward (visual path)
# ---------------------------------------------------------------------------
def nlvr2_forward(feat, pos, params, *, tile_b=None):
    """
    feat: (b, 2, o, f) float32
    pos:  (b, 2, o, 4) float32
    returns logits (b, 2) float32
    """
    b, img_num, obj_num, feat_size = feat.shape
    assert img_num == 2 and obj_num == OBJ and feat_size == FEAT
    # sent = sum(zip(sent, sent), ())  -> text path omitted (see module TODO).

    if tile_b is None:
        # Default: >= 2 grid steps (v7x megacore) with 8-row-aligned tiles.
        if b >= 16 and b % 16 == 0:
            tile_b = (b // 2) - ((b // 2) % 8)
        else:
            tile_b = b

    # Ragged batches: zero-pad to a tile multiple, slice the result back.
    pad_b = (-b) % tile_b
    if pad_b:
        feat = jnp.pad(feat, ((0, pad_b), (0, 0), (0, 0), (0, 0)))
        pos = jnp.pad(pos, ((0, pad_b), (0, 0), (0, 0), (0, 0)))
    bp = b + pad_b
    rows = bp * 2 * obj_num
    rows_per_tile = tile_b * 2 * obj_num

    # Wrapper-side layout plumbing (no concat; separate feat / pos operands).
    feat2d = feat.reshape(rows, feat_size).astype(jnp.bfloat16)
    pos2d = pos.reshape(rows, 4).astype(jnp.bfloat16)

    # bf16 weights for every MXU operand.
    wf = params["wf"].astype(jnp.bfloat16)               # (F, H)
    wp = params["wp"].astype(jnp.bfloat16)               # (4, H)
    w1a = params["w1"][:HID, :].astype(jnp.bfloat16)     # (H, 2H)
    w1b = params["w1"][HID:, :].astype(jnp.bfloat16)     # (H, 2H)
    w2p = (jnp.zeros((2 * HID, OUT_PAD), jnp.float32)
           .at[:, :2].set(params["w2"]).astype(jnp.bfloat16))
    b2p = jnp.zeros((1, OUT_PAD), jnp.float32).at[:, :2].set(params["b2"])
    b_enc, b1 = params["b_enc"], params["b1"]
    gamma, beta = params["gamma"], params["beta"]

    # Stacked pooling matrix: rows [0, T) average image 0 of each sample,
    # rows [T, 2T) average image 1.  Constant across grid steps.
    img_of_row = jnp.arange(rows_per_tile) // obj_num     # 0 .. 2*tile_b-1
    samp = jnp.arange(tile_b)
    pool0 = (img_of_row[None, :] == 2 * samp[:, None]).astype(jnp.float32)
    pool1 = (img_of_row[None, :] == 2 * samp[:, None] + 1).astype(jnp.float32)
    pool = (jnp.concatenate([pool0, pool1], axis=0) / obj_num).astype(jnp.bfloat16)

    consts = (wf, wp, b_enc, pool, w1a, w1b, b1, gamma, beta, w2p, b2p)

    # Explicit VMEM budget: double-buffered streaming tiles + resident
    # constants + f32 intermediates, with 2x headroom.
    def nbytes(a):
        return a.size * a.dtype.itemsize
    tile_in = rows_per_tile * (feat_size + 4) * 2                 # bf16 feat+pos tile
    tile_out = tile_b * OUT_PAD * 4
    const_bytes = sum(nbytes(a) for a in consts)
    interm = (rows_per_tile * HID * 4 + 2 * tile_b * HID * 4
              + 4 * tile_b * 2 * HID * 4)                         # h, p, z temporaries
    vmem_limit = 2 * (2 * (tile_in + tile_out) + 2 * const_bytes + interm)
    vmem_limit = int(min(max(vmem_limit, 4 * 1024 * 1024), 100 * 1024 * 1024))

    def _const_spec(arr, single_buffer):
        if single_buffer:
            # Constant-index blocks never change across grid steps: single
            # buffer halves their VMEM footprint (biggest payoff on v7x 64MiB).
            return pl.BlockSpec(arr.shape, lambda i: (0, 0),
                                pipeline_mode=pl.Buffered(1))
        return pl.BlockSpec(arr.shape, lambda i: (0, 0))

    def _run(single_buffer_consts):
        cspecs = [_const_spec(a, single_buffer_consts) for a in consts]
        out = pl.pallas_call(
            nlvr2_fused_kernel,
            out_shape=jax.ShapeDtypeStruct((bp, OUT_PAD), jnp.float32),
            grid=(bp // tile_b,),
            in_specs=[
                pl.BlockSpec((rows_per_tile, feat_size), lambda i: (i, 0)),
                pl.BlockSpec((rows_per_tile, 4), lambda i: (i, 0)),
            ] + cspecs,
            out_specs=pl.BlockSpec((tile_b, OUT_PAD), lambda i: (i, 0)),
            compiler_params=pltpu.CompilerParams(
                dimension_semantics=("parallel",),
                vmem_limit_bytes=vmem_limit),
        )(feat2d, pos2d, *consts)
        return jax.block_until_ready(out)

    try:
        padded = _run(True)
    except Exception:
        # pl.Buffered(1) unsupported on this jax build -> default buffering.
        padded = _run(False)

    return padded[:b, :2]


# ---------------------------------------------------------------------------
# Pure-JAX reference of the same stand-in forward (mirrors the kernel's bf16
# operand casts; note this does not detect bf16 drift vs. a pure-f32 model).
# ---------------------------------------------------------------------------
def nlvr2_reference(feat, pos, params):
    b = feat.shape[0]
    rows = b * 2 * OBJ
    f = feat.reshape(rows, FEAT).astype(jnp.bfloat16)
    p4 = pos.reshape(rows, 4).astype(jnp.bfloat16)
    h = jnp.tanh(
        jnp.dot(f, params["wf"].astype(jnp.bfloat16),
                preferred_element_type=jnp.float32)
        + jnp.dot(p4, params["wp"].astype(jnp.bfloat16),
                  preferred_element_type=jnp.float32)
        + params["b_enc"])
    pooled = h.reshape(b * 2, OBJ, HID).mean(axis=1)
    x = pooled.reshape(b, 2 * HID).astype(jnp.bfloat16)
    z = jnp.dot(x, params["w1"].astype(jnp.bfloat16),
                preferred_element_type=jnp.float32) + params["b1"]
    z = z * 0.5 * (1.0 + jax.lax.erf(z / math.sqrt(2.0)))
    mu = z.mean(-1, keepdims=True)
    var = ((z - mu) ** 2).mean(-1, keepdims=True)
    z = (z - mu) * jax.lax.rsqrt(var + 1e-12) * params["gamma"] + params["beta"]
    return (jnp.dot(z.astype(jnp.bfloat16), params["w2"].astype(jnp.bfloat16),
                    preferred_element_type=jnp.float32) + params["b2"])


def init_params(key):
    # init_bert_weights: Linear weight ~ N(0, 0.02), bias = 0;
    # LayerNorm gamma = 1, beta = 0.
    ks = jax.random.split(key, 4)
    std = 0.02
    return {
        # stand-in encoder params
        "wf": jax.random.normal(ks[0], (FEAT, HID), jnp.float32) * std,
        "wp": jax.random.normal(ks[1], (4, HID), jnp.float32) * std,
        "b_enc": jnp.zeros((1, HID), jnp.float32),
        # logit_fc params
        "w1": jax.random.normal(ks[2], (2 * HID, 2 * HID), jnp.float32) * std,
        "b1": jnp.zeros((1, 2 * HID), jnp.float32),
        "gamma": jnp.ones((1, 2 * HID), jnp.float32),
        "beta": jnp.zeros((1, 2 * HID), jnp.float32),
        "w2": jax.random.normal(ks[3], (2 * HID, 2), jnp.float32) * std,
        "b2": jnp.zeros((1, 2), jnp.float32),
    }


if __name__ == "__main__":
    key = jax.random.PRNGKey(0)
    k_feat, k_pos, k_param = jax.random.split(key, 3)

    b = 16                      # -> default tile_b = 8, grid = (2,)
    feat = jax.random.normal(k_feat, (b, 2, OBJ, FEAT), jnp.float32)
    pos = jax.random.uniform(k_pos, (b, 2, OBJ, 4), jnp.float32)
    params = init_params(k_param)

    logit = nlvr2_forward(feat, pos, params)
    jax.block_until_ready(logit)
    assert logit.shape == (b, 2) and logit.dtype == jnp.float32

    ref = nlvr2_reference(feat, pos, params)
    assert bool(jnp.allclose(logit, ref, atol=3e-2, rtol=3e-2)), (logit, ref)

    print("KERNEL_OK")
</pallas_src>

<mosaic_0001>
module attributes {stable_mosaic.version = 11 : i64} {
  func.func @nlvr2_fused_kernel(%arg0: i32, %arg1: memref<128x64xbf16, #tpu.memory_space<vmem>>, %arg2: memref<128x4xbf16, #tpu.memory_space<vmem>>, %arg3: memref<64x32xbf16, #tpu.memory_space<vmem>>, %arg4: memref<4x32xbf16, #tpu.memory_space<vmem>>, %arg5: memref<1x32xf32, #tpu.memory_space<vmem>>, %arg6: memref<16x128xbf16, #tpu.memory_space<vmem>>, %arg7: memref<32x64xbf16, #tpu.memory_space<vmem>>, %arg8: memref<32x64xbf16, #tpu.memory_space<vmem>>, %arg9: memref<1x64xf32, #tpu.memory_space<vmem>>, %arg10: memref<1x64xf32, #tpu.memory_space<vmem>>, %arg11: memref<1x64xf32, #tpu.memory_space<vmem>>, %arg12: memref<64x128xbf16, #tpu.memory_space<vmem>>, %arg13: memref<1x128xf32, #tpu.memory_space<vmem>>, %arg14: memref<8x128xf32, #tpu.memory_space<vmem>>) attributes {dimension_semantics = [#tpu.dimension_semantics<parallel>], iteration_bounds = array<i64: 2>, scalar_prefetch = 0 : i64, scratch_operands = 0 : i64, tpu.core_type = #tpu.core_type<tc>, window_params = [{transform_indices = @transform_0, window_bounds = array<i64: 128, 64>}, {transform_indices = @transform_1, window_bounds = array<i64: 128, 4>}, {pipeline_mode = #tpu.pipeline_mode<synchronous>, transform_indices = @transform_2, window_bounds = array<i64: 64, 32>}, {pipeline_mode = #tpu.pipeline_mode<synchronous>, transform_indices = @transform_3, window_bounds = array<i64: 4, 32>}, {pipeline_mode = #tpu.pipeline_mode<synchronous>, transform_indices = @transform_4, window_bounds = array<i64: 1, 32>}, {pipeline_mode = #tpu.pipeline_mode<synchronous>, transform_indices = @transform_5, window_bounds = array<i64: 16, 128>}, {pipeline_mode = #tpu.pipeline_mode<synchronous>, transform_indices = @transform_6, window_bounds = array<i64: 32, 64>}, {pipeline_mode = #tpu.pipeline_mode<synchronous>, transform_indices = @transform_7, window_bounds = array<i64: 32, 64>}, {pipeline_mode = #tpu.pipeline_mode<synchronous>, transform_indices = @transform_8, window_bounds = array<i64: 1, 64>}, {pipeline_mode = #tpu.pipeline_mode<synchronous>, transform_indices = @transform_9, window_bounds = array<i64: 1, 64>}, {pipeline_mode = #tpu.pipeline_mode<synchronous>, transform_indices = @transform_10, window_bounds = array<i64: 1, 64>}, {pipeline_mode = #tpu.pipeline_mode<synchronous>, transform_indices = @transform_11, window_bounds = array<i64: 64, 128>}, {pipeline_mode = #tpu.pipeline_mode<synchronous>, transform_indices = @transform_12, window_bounds = array<i64: 1, 128>}, {transform_indices = @transform_13, window_bounds = array<i64: 8, 128>}]} {
    %c0 = arith.constant 0 : index
    %c0_0 = arith.constant 0 : index
    %0 = vector.load %arg1[%c0, %c0_0] : memref<128x64xbf16, #tpu.memory_space<vmem>>, vector<128x64xbf16>
    %c0_1 = arith.constant 0 : index
    %c0_2 = arith.constant 0 : index
    %1 = vector.load %arg3[%c0_1, %c0_2] : memref<64x32xbf16, #tpu.memory_space<vmem>>, vector<64x32xbf16>
    %cst = arith.constant dense<0.000000e+00> : vector<128x32xf32>
    %2 = tpu.matmul %0, %1, %cst {dimension_numbers = #tpu.dot_dimension_numbers<[1], [0], [0], [1], [0, 0, 1, 1], [], []>} : vector<128x64xbf16>, vector<64x32xbf16>, vector<128x32xf32> -> vector<128x32xf32>
    %c0_3 = arith.constant 0 : index
    %c0_4 = arith.constant 0 : index
    %3 = vector.load %arg2[%c0_3, %c0_4] : memref<128x4xbf16, #tpu.memory_space<vmem>>, vector<128x4xbf16>
    %c0_5 = arith.constant 0 : index
    %c0_6 = arith.constant 0 : index
    %4 = vector.load %arg4[%c0_5, %c0_6] : memref<4x32xbf16, #tpu.memory_space<vmem>>, vector<4x32xbf16>
    %cst_7 = arith.constant dense<0.000000e+00> : vector<128x32xf32>
    %5 = tpu.matmul %3, %4, %cst_7 {dimension_numbers = #tpu.dot_dimension_numbers<[1], [0], [0], [1], [0, 0, 1, 1], [], []>} : vector<128x4xbf16>, vector<4x32xbf16>, vector<128x32xf32> -> vector<128x32xf32>
    %6 = arith.addf %2, %5 : vector<128x32xf32>
    %c0_8 = arith.constant 0 : index
    %c0_9 = arith.constant 0 : index
    %7 = vector.load %arg5[%c0_8, %c0_9] : memref<1x32xf32, #tpu.memory_space<vmem>>, vector<1x32xf32>
    %8 = vector.broadcast %7 : vector<1x32xf32> to vector<128x32xf32>
    %9 = arith.addf %6, %8 : vector<128x32xf32>
    %10 = math.tanh %9 : vector<128x32xf32>
    %c0_10 = arith.constant 0 : index
    %c0_11 = arith.constant 0 : index
    %11 = vector.load %arg6[%c0_10, %c0_11] : memref<16x128xbf16, #tpu.memory_space<vmem>>, vector<16x128xbf16>
    %12 = arith.truncf %10 : vector<128x32xf32> to vector<128x32xbf16>
    %cst_12 = arith.constant dense<0.000000e+00> : vector<16x32xf32>
    %13 = tpu.matmul %11, %12, %cst_12 {dimension_numbers = #tpu.dot_dimension_numbers<[1], [0], [0], [1], [0, 0, 1, 1], [], []>} : vector<16x128xbf16>, vector<128x32xbf16>, vector<16x32xf32> -> vector<16x32xf32>
    %14 = vector.extract_strided_slice %13 {offsets = [0, 0], sizes = [8, 32], strides = [1, 1]} : vector<16x32xf32> to vector<8x32xf32>
    %15 = arith.truncf %14 : vector<8x32xf32> to vector<8x32xbf16>
    %16 = vector.extract_strided_slice %13 {offsets = [8, 0], sizes = [8, 32], strides = [1, 1]} : vector<16x32xf32> to vector<8x32xf32>
    %17 = arith.truncf %16 : vector<8x32xf32> to vector<8x32xbf16>
    %c0_13 = arith.constant 0 : index
    %c0_14 = arith.constant 0 : index
    %18 = vector.load %arg7[%c0_13, %c0_14] : memref<32x64xbf16, #tpu.memory_space<vmem>>, vector<32x64xbf16>
    %cst_15 = arith.constant dense<0.000000e+00> : vector<8x64xf32>
    %19 = tpu.matmul %15, %18, %cst_15 {dimension_numbers = #tpu.dot_dimension_numbers<[1], [0], [0], [1], [0, 0, 1, 1], [], []>} : vector<8x32xbf16>, vector<32x64xbf16>, vector<8x64xf32> -> vector<8x64xf32>
    %c0_16 = arith.constant 0 : index
    %c0_17 = arith.constant 0 : index
    %20 = vector.load %arg8[%c0_16, %c0_17] : memref<32x64xbf16, #tpu.memory_space<vmem>>, vector<32x64xbf16>
    %cst_18 = arith.constant dense<0.000000e+00> : vector<8x64xf32>
    %21 = tpu.matmul %17, %20, %cst_18 {dimension_numbers = #tpu.dot_dimension_numbers<[1], [0], [0], [1], [0, 0, 1, 1], [], []>} : vector<8x32xbf16>, vector<32x64xbf16>, vector<8x64xf32> -> vector<8x64xf32>
    %22 = arith.addf %19, %21 : vector<8x64xf32>
    %c0_19 = arith.constant 0 : index
    %c0_20 = arith.constant 0 : index
    %23 = vector.load %arg9[%c0_19, %c0_20] : memref<1x64xf32, #tpu.memory_space<vmem>>, vector<1x64xf32>
    %24 = vector.broadcast %23 : vector<1x64xf32> to vector<8x64xf32>
    %25 = arith.addf %22, %24 : vector<8x64xf32>
    %cst_21 = arith.constant 5.000000e-01 : f32
    %26 = vector.broadcast %cst_21 : f32 to vector<8x64xf32>
    %27 = arith.mulf %25, %26 : vector<8x64xf32>
    %cst_22 = arith.constant 0.707106769 : f32
    %28 = vector.broadcast %cst_22 : f32 to vector<8x64xf32>
    %29 = arith.mulf %25, %28 : vector<8x64xf32>
    %30 = math.erf %29 : vector<8x64xf32>
    %cst_23 = arith.constant 1.000000e+00 : f32
    %31 = vector.broadcast %cst_23 : f32 to vector<8x64xf32>
    %32 = arith.addf %31, %30 : vector<8x64xf32>
    %33 = arith.mulf %27, %32 : vector<8x64xf32>
    %cst_24 = arith.constant dense<0.000000e+00> : vector<8xf32>
    %34 = vector.multi_reduction <add>, %33, %cst_24 [1] : vector<8x64xf32> to vector<8xf32>
    %35 = vector.shape_cast %34 : vector<8xf32> to vector<8x1xf32>
    %cst_25 = arith.constant 6.400000e+01 : f32
    %36 = vector.broadcast %cst_25 : f32 to vector<8x1xf32>
    %37 = arith.divf %35, %36 : vector<8x1xf32>
    %38 = vector.broadcast %37 : vector<8x1xf32> to vector<8x64xf32>
    %39 = arith.subf %33, %38 : vector<8x64xf32>
    %40 = vector.broadcast %37 : vector<8x1xf32> to vector<8x64xf32>
    %41 = arith.subf %33, %40 : vector<8x64xf32>
    %42 = arith.mulf %39, %41 : vector<8x64xf32>
    %cst_26 = arith.constant dense<0.000000e+00> : vector<8xf32>
    %43 = vector.multi_reduction <add>, %42, %cst_26 [1] : vector<8x64xf32> to vector<8xf32>
    %44 = vector.shape_cast %43 : vector<8xf32> to vector<8x1xf32>
    %cst_27 = arith.constant 6.400000e+01 : f32
    %45 = vector.broadcast %cst_27 : f32 to vector<8x1xf32>
    %46 = arith.divf %44, %45 : vector<8x1xf32>
    %47 = vector.broadcast %37 : vector<8x1xf32> to vector<8x64xf32>
    %48 = arith.subf %33, %47 : vector<8x64xf32>
    %cst_28 = arith.constant 9.99999996E-13 : f32
    %49 = vector.broadcast %cst_28 : f32 to vector<8x1xf32>
    %50 = arith.addf %46, %49 : vector<8x1xf32>
    %51 = math.rsqrt %50 : vector<8x1xf32>
    %52 = vector.broadcast %51 : vector<8x1xf32> to vector<8x64xf32>
    %53 = arith.mulf %48, %52 : vector<8x64xf32>
    %c0_29 = arith.constant 0 : index
    %c0_30 = arith.constant 0 : index
    %54 = vector.load %arg10[%c0_29, %c0_30] : memref<1x64xf32, #tpu.memory_space<vmem>>, vector<1x64xf32>
    %55 = vector.broadcast %54 : vector<1x64xf32> to vector<8x64xf32>
    %56 = arith.mulf %53, %55 : vector<8x64xf32>
    %c0_31 = arith.constant 0 : index
    %c0_32 = arith.constant 0 : index
    %57 = vector.load %arg11[%c0_31, %c0_32] : memref<1x64xf32, #tpu.memory_space<vmem>>, vector<1x64xf32>
    %58 = vector.broadcast %57 : vector<1x64xf32> to vector<8x64xf32>
    %59 = arith.addf %56, %58 : vector<8x64xf32>
    %60 = arith.truncf %59 : vector<8x64xf32> to vector<8x64xbf16>
    %c0_33 = arith.constant 0 : index
    %c0_34 = arith.constant 0 : index
    %61 = vector.load %arg12[%c0_33, %c0_34] : memref<64x128xbf16, #tpu.memory_space<vmem>>, vector<64x128xbf16>
    %cst_35 = arith.constant dense<0.000000e+00> : vector<8x128xf32>
    %62 = tpu.matmul %60, %61, %cst_35 {dimension_numbers = #tpu.dot_dimension_numbers<[1], [0], [0], [1], [0, 0, 1, 1], [], []>} : vector<8x64xbf16>, vector<64x128xbf16>, vector<8x128xf32> -> vector<8x128xf32>
    %c0_36 = arith.constant 0 : index
    %c0_37 = arith.constant 0 : index
    %63 = vector.load %arg13[%c0_36, %c0_37] : memref<1x128xf32, #tpu.memory_space<vmem>>, vector<1x128xf32>
    %64 = vector.broadcast %63 : vector<1x128xf32> to vector<8x128xf32>
    %65 = arith.addf %62, %64 : vector<8x128xf32>
    %c0_38 = arith.constant 0 : index
    %c0_39 = arith.constant 0 : index
    %66 = vector.load %arg14[%c0_38, %c0_39] : memref<8x128xf32, #tpu.memory_space<vmem>>, vector<8x128xf32>
    tpu.vector_store %arg14[%c0_38, %c0_39], %65 {strides = array<i32>} : memref<8x128xf32, #tpu.memory_space<vmem>>, vector<8x128xf32>,
    return
  }
  func.func @transform_0(%arg0: i32) -> (i32, i32) {
    %c0_i32 = arith.constant 0 : i32
    %c0_i32_0 = arith.constant 0 : i32
    return %arg0, %c0_i32 : i32, i32
  }
  func.func @transform_1(%arg0: i32) -> (i32, i32) {
    %c0_i32 = arith.constant 0 : i32
    %c0_i32_0 = arith.constant 0 : i32
    return %arg0, %c0_i32 : i32, i32
  }
  func.func @transform_2(%arg0: i32) -> (i32, i32) {
    %c0_i32 = arith.constant 0 : i32
    %c0_i32_0 = arith.constant 0 : i32
    %c0_i32_1 = arith.constant 0 : i32
    return %c0_i32, %c0_i32_0 : i32, i32
  }
  func.func @transform_3(%arg0: i32) -> (i32, i32) {
    %c0_i32 = arith.constant 0 : i32
    %c0_i32_0 = arith.constant 0 : i32
    %c0_i32_1 = arith.constant 0 : i32
    return %c0_i32, %c0_i32_0 : i32, i32
  }
  func.func @transform_4(%arg0: i32) -> (i32, i32) {
    %c0_i32 = arith.constant 0 : i32
    %c0_i32_0 = arith.constant 0 : i32
    %c0_i32_1 = arith.constant 0 : i32
    return %c0_i32, %c0_i32_0 : i32, i32
  }
  func.func @transform_5(%arg0: i32) -> (i32, i32) {
    %c0_i32 = arith.constant 0 : i32
    %c0_i32_0 = arith.constant 0 : i32
    %c0_i32_1 = arith.constant 0 : i32
    return %c0_i32, %c0_i32_0 : i32, i32
  }
  func.func @transform_6(%arg0: i32) -> (i32, i32) {
    %c0_i32 = arith.constant 0 : i32
    %c0_i32_0 = arith.constant 0 : i32
    %c0_i32_1 = arith.constant 0 : i32
    return %c0_i32, %c0_i32_0 : i32, i32
  }
  func.func @transform_7(%arg0: i32) -> (i32, i32) {
    %c0_i32 = arith.constant 0 : i32
    %c0_i32_0 = arith.constant 0 : i32
    %c0_i32_1 = arith.constant 0 : i32
    return %c0_i32, %c0_i32_0 : i32, i32
  }
  func.func @transform_8(%arg0: i32) -> (i32, i32) {
    %c0_i32 = arith.constant 0 : i32
    %c0_i32_0 = arith.constant 0 : i32
    %c0_i32_1 = arith.constant 0 : i32
    return %c0_i32, %c0_i32_0 : i32, i32
  }
  func.func @transform_9(%arg0: i32) -> (i32, i32) {
    %c0_i32 = arith.constant 0 : i32
    %c0_i32_0 = arith.constant 0 : i32
    %c0_i32_1 = arith.constant 0 : i32
    return %c0_i32, %c0_i32_0 : i32, i32
  }
  func.func @transform_10(%arg0: i32) -> (i32, i32) {
    %c0_i32 = arith.constant 0 : i32
    %c0_i32_0 = arith.constant 0 : i32
    %c0_i32_1 = arith.constant 0 : i32
    return %c0_i32, %c0_i32_0 : i32, i32
  }
  func.func @transform_11(%arg0: i32) -> (i32, i32) {
    %c0_i32 = arith.constant 0 : i32
    %c0_i32_0 = arith.constant 0 : i32
    %c0_i32_1 = arith.constant 0 : i32
    return %c0_i32, %c0_i32_0 : i32, i32
  }
  func.func @transform_12(%arg0: i32) -> (i32, i32) {
    %c0_i32 = arith.constant 0 : i32
    %c0_i32_0 = arith.constant 0 : i32
    %c0_i32_1 = arith.constant 0 : i32
    return %c0_i32, %c0_i32_0 : i32, i32
  }
  func.func @transform_13(%arg0: i32) -> (i32, i32) {
    %c0_i32 = arith.constant 0 : i32
    %c0_i32_0 = arith.constant 0 : i32
    return %arg0, %c0_i32 : i32, i32
  }
}

module attributes {stable_mosaic.version = 11 : i64} {
  func.func @nlvr2_fused_kernel(%arg0: i32, %arg1: memref<128x64xbf16, #tpu.memory_space<vmem>>, %arg2: memref<128x4xbf16, #tpu.memory_space<vmem>>, %arg3: memref<64x32xbf16, #tpu.memory_space<vmem>>, %arg4: memref<4x32xbf16, #tpu.memory_space<vmem>>, %arg5: memref<1x32xf32, #tpu.memory_space<vmem>>, %arg6: memref<16x128xbf16, #tpu.memory_space<vmem>>, %arg7: memref<32x64xbf16, #tpu.memory_space<vmem>>, %arg8: memref<32x64xbf16, #tpu.memory_space<vmem>>, %arg9: memref<1x64xf32, #tpu.memory_space<vmem>>, %arg10: memref<1x64xf32, #tpu.memory_space<vmem>>, %arg11: memref<1x64xf32, #tpu.memory_space<vmem>>, %arg12: memref<64x128xbf16, #tpu.memory_space<vmem>>, %arg13: memref<1x128xf32, #tpu.memory_space<vmem>>, %arg14: memref<8x128xf32, #tpu.memory_space<vmem>>) attributes {dimension_semantics = [#tpu.dimension_semantics<parallel>], iteration_bounds = array<i64: 2>, scalar_prefetch = 0 : i64, scratch_operands = 0 : i64, tpu.core_type = #tpu.core_type<tc>, window_params = [{transform_indices = @transform_0, window_bounds = array<i64: 128, 64>}, {transform_indices = @transform_1, window_bounds = array<i64: 128, 4>}, {pipeline_mode = #tpu.pipeline_mode<synchronous>, transform_indices = @transform_2, window_bounds = array<i64: 64, 32>}, {pipeline_mode = #tpu.pipeline_mode<synchronous>, transform_indices = @transform_3, window_bounds = array<i64: 4, 32>}, {pipeline_mode = #tpu.pipeline_mode<synchronous>, transform_indices = @transform_4, window_bounds = array<i64: 1, 32>}, {pipeline_mode = #tpu.pipeline_mode<synchronous>, transform_indices = @transform_5, window_bounds = array<i64: 16, 128>}, {pipeline_mode = #tpu.pipeline_mode<synchronous>, transform_indices = @transform_6, window_bounds = array<i64: 32, 64>}, {pipeline_mode = #tpu.pipeline_mode<synchronous>, transform_indices = @transform_7, window_bounds = array<i64: 32, 64>}, {pipeline_mode = #tpu.pipeline_mode<synchronous>, transform_indices = @transform_8, window_bounds = array<i64: 1, 64>}, {pipeline_mode = #tpu.pipeline_mode<synchronous>, transform_indices = @transform_9, window_bounds = array<i64: 1, 64>}, {pipeline_mode = #tpu.pipeline_mode<synchronous>, transform_indices = @transform_10, window_bounds = array<i64: 1, 64>}, {pipeline_mode = #tpu.pipeline_mode<synchronous>, transform_indices = @transform_11, window_bounds = array<i64: 64, 128>}, {pipeline_mode = #tpu.pipeline_mode<synchronous>, transform_indices = @transform_12, window_bounds = array<i64: 1, 128>}, {transform_indices = @transform_13, window_bounds = array<i64: 8, 128>}]} {
    %c0 = arith.constant 0 : index
    %c0_0 = arith.constant 0 : index
    %0 = vector.load %arg1[%c0, %c0_0] : memref<128x64xbf16, #tpu.memory_space<vmem>>, vector<128x64xbf16>
    %c0_1 = arith.constant 0 : index
    %c0_2 = arith.constant 0 : index
    %1 = vector.load %arg3[%c0_1, %c0_2] : memref<64x32xbf16, #tpu.memory_space<vmem>>, vector<64x32xbf16>
    %cst = arith.constant dense<0.000000e+00> : vector<128x32xf32>
    %2 = tpu.matmul %0, %1, %cst {dimension_numbers = #tpu.dot_dimension_numbers<[1], [0], [0], [1], [0, 0, 1, 1], [], []>} : vector<128x64xbf16>, vector<64x32xbf16>, vector<128x32xf32> -> vector<128x32xf32>
    %c0_3 = arith.constant 0 : index
    %c0_4 = arith.constant 0 : index
    %3 = vector.load %arg2[%c0_3, %c0_4] : memref<128x4xbf16, #tpu.memory_space<vmem>>, vector<128x4xbf16>
    %c0_5 = arith.constant 0 : index
    %c0_6 = arith.constant 0 : index
    %4 = vector.load %arg4[%c0_5, %c0_6] : memref<4x32xbf16, #tpu.memory_space<vmem>>, vector<4x32xbf16>
    %cst_7 = arith.constant dense<0.000000e+00> : vector<128x32xf32>
    %5 = tpu.matmul %3, %4, %cst_7 {dimension_numbers = #tpu.dot_dimension_numbers<[1], [0], [0], [1], [0, 0, 1, 1], [], []>} : vector<128x4xbf16>, vector<4x32xbf16>, vector<128x32xf32> -> vector<128x32xf32>
    %6 = arith.addf %2, %5 : vector<128x32xf32>
    %c0_8 = arith.constant 0 : index
    %c0_9 = arith.constant 0 : index
    %7 = vector.load %arg5[%c0_8, %c0_9] : memref<1x32xf32, #tpu.memory_space<vmem>>, vector<1x32xf32>
    %8 = vector.broadcast %7 : vector<1x32xf32> to vector<128x32xf32>
    %9 = arith.addf %6, %8 : vector<128x32xf32>
    %10 = math.tanh %9 : vector<128x32xf32>
    %c0_10 = arith.constant 0 : index
    %c0_11 = arith.constant 0 : index
    %11 = vector.load %arg6[%c0_10, %c0_11] : memref<16x128xbf16, #tpu.memory_space<vmem>>, vector<16x128xbf16>
    %12 = arith.truncf %10 : vector<128x32xf32> to vector<128x32xbf16>
    %cst_12 = arith.constant dense<0.000000e+00> : vector<16x32xf32>
    %13 = tpu.matmul %11, %12, %cst_12 {dimension_numbers = #tpu.dot_dimension_numbers<[1], [0], [0], [1], [0, 0, 1, 1], [], []>} : vector<16x128xbf16>, vector<128x32xbf16>, vector<16x32xf32> -> vector<16x32xf32>
    %14 = vector.extract_strided_slice %13 {offsets = [0, 0], sizes = [8, 32], strides = [1, 1]} : vector<16x32xf32> to vector<8x32xf32>
    %15 = arith.truncf %14 : vector<8x32xf32> to vector<8x32xbf16>
    %16 = vector.extract_strided_slice %13 {offsets = [8, 0], sizes = [8, 32], strides = [1, 1]} : vector<16x32xf32> to vector<8x32xf32>
    %17 = arith.truncf %16 : vector<8x32xf32> to vector<8x32xbf16>
    %c0_13 = arith.constant 0 : index
    %c0_14 = arith.constant 0 : index
    %18 = vector.load %arg7[%c0_13, %c0_14] : memref<32x64xbf16, #tpu.memory_space<vmem>>, vector<32x64xbf16>
    %cst_15 = arith.constant dense<0.000000e+00> : vector<8x64xf32>
    %19 = tpu.matmul %15, %18, %cst_15 {dimension_numbers = #tpu.dot_dimension_numbers<[1], [0], [0], [1], [0, 0, 1, 1], [], []>} : vector<8x32xbf16>, vector<32x64xbf16>, vector<8x64xf32> -> vector<8x64xf32>
    %c0_16 = arith.constant 0 : index
    %c0_17 = arith.constant 0 : index
    %20 = vector.load %arg8[%c0_16, %c0_17] : memref<32x64xbf16, #tpu.memory_space<vmem>>, vector<32x64xbf16>
    %cst_18 = arith.constant dense<0.000000e+00> : vector<8x64xf32>
    %21 = tpu.matmul %17, %20, %cst_18 {dimension_numbers = #tpu.dot_dimension_numbers<[1], [0], [0], [1], [0, 0, 1, 1], [], []>} : vector<8x32xbf16>, vector<32x64xbf16>, vector<8x64xf32> -> vector<8x64xf32>
    %22 = arith.addf %19, %21 : vector<8x64xf32>
    %c0_19 = arith.constant 0 : index
    %c0_20 = arith.constant 0 : index
    %23 = vector.load %arg9[%c0_19, %c0_20] : memref<1x64xf32, #tpu.memory_space<vmem>>, vector<1x64xf32>
    %24 = vector.broadcast %23 : vector<1x64xf32> to vector<8x64xf32>
    %25 = arith.addf %22, %24 : vector<8x64xf32>
    %cst_21 = arith.constant 5.000000e-01 : f32
    %26 = vector.broadcast %cst_21 : f32 to vector<8x64xf32>
    %27 = arith.mulf %25, %26 : vector<8x64xf32>
    %cst_22 = arith.constant 0.707106769 : f32
    %28 = vector.broadcast %cst_22 : f32 to vector<8x64xf32>
    %29 = arith.mulf %25, %28 : vector<8x64xf32>
    %30 = math.erf %29 : vector<8x64xf32>
    %cst_23 = arith.constant 1.000000e+00 : f32
    %31 = vector.broadcast %cst_23 : f32 to vector<8x64xf32>
    %32 = arith.addf %31, %30 : vector<8x64xf32>
    %33 = arith.mulf %27, %32 : vector<8x64xf32>
    %cst_24 = arith.constant dense<0.000000e+00> : vector<8xf32>
    %34 = vector.multi_reduction <add>, %33, %cst_24 [1] : vector<8x64xf32> to vector<8xf32>
    %35 = vector.shape_cast %34 : vector<8xf32> to vector<8x1xf32>
    %cst_25 = arith.constant 6.400000e+01 : f32
    %36 = vector.broadcast %cst_25 : f32 to vector<8x1xf32>
    %37 = arith.divf %35, %36 : vector<8x1xf32>
    %38 = vector.broadcast %37 : vector<8x1xf32> to vector<8x64xf32>
    %39 = arith.subf %33, %38 : vector<8x64xf32>
    %40 = vector.broadcast %37 : vector<8x1xf32> to vector<8x64xf32>
    %41 = arith.subf %33, %40 : vector<8x64xf32>
    %42 = arith.mulf %39, %41 : vector<8x64xf32>
    %cst_26 = arith.constant dense<0.000000e+00> : vector<8xf32>
    %43 = vector.multi_reduction <add>, %42, %cst_26 [1] : vector<8x64xf32> to vector<8xf32>
    %44 = vector.shape_cast %43 : vector<8xf32> to vector<8x1xf32>
    %cst_27 = arith.constant 6.400000e+01 : f32
    %45 = vector.broadcast %cst_27 : f32 to vector<8x1xf32>
    %46 = arith.divf %44, %45 : vector<8x1xf32>
    %47 = vector.broadcast %37 : vector<8x1xf32> to vector<8x64xf32>
    %48 = arith.subf %33, %47 : vector<8x64xf32>
    %cst_28 = arith.constant 9.99999996E-13 : f32
    %49 = vector.broadcast %cst_28 : f32 to vector<8x1xf32>
    %50 = arith.addf %46, %49 : vector<8x1xf32>
    %51 = math.rsqrt %50 : vector<8x1xf32>
    %52 = vector.broadcast %51 : vector<8x1xf32> to vector<8x64xf32>
    %53 = arith.mulf %48, %52 : vector<8x64xf32>
    %c0_29 = arith.constant 0 : index
    %c0_30 = arith.constant 0 : index
    %54 = vector.load %arg10[%c0_29, %c0_30] : memref<1x64xf32, #tpu.memory_space<vmem>>, vector<1x64xf32>
    %55 = vector.broadcast %54 : vector<1x64xf32> to vector<8x64xf32>
    %56 = arith.mulf %53, %55 : vector<8x64xf32>
    %c0_31 = arith.constant 0 : index
    %c0_32 = arith.constant 0 : index
    %57 = vector.load %arg11[%c0_31, %c0_32] : memref<1x64xf32, #tpu.memory_space<vmem>>, vector<1x64xf32>
    %58 = vector.broadcast %57 : vector<1x64xf32> to vector<8x64xf32>
    %59 = arith.addf %56, %58 : vector<8x64xf32>
    %60 = arith.truncf %59 : vector<8x64xf32> to vector<8x64xbf16>
    %c0_33 = arith.constant 0 : index
    %c0_34 = arith.constant 0 : index
    %61 = vector.load %arg12[%c0_33, %c0_34] : memref<64x128xbf16, #tpu.memory_space<vmem>>, vector<64x128xbf16>
    %cst_35 = arith.constant dense<0.000000e+00> : vector<8x128xf32>
    %62 = tpu.matmul %60, %61, %cst_35 {dimension_numbers = #tpu.dot_dimension_numbers<[1], [0], [0], [1], [0, 0, 1, 1], [], []>} : vector<8x64xbf16>, vector<64x128xbf16>, vector<8x128xf32> -> vector<8x128xf32>
    %c0_36 = arith.constant 0 : index
    %c0_37 = arith.constant 0 : index
    %63 = vector.load %arg13[%c0_36, %c0_37] : memref<1x128xf32, #tpu.memory_space<vmem>>, vector<1x128xf32>
    %64 = vector.broadcast %63 : vector<1x128xf32> to vector<8x128xf32>
    %65 = arith.addf %62, %64 : vector<8x128xf32>
    %c0_38 = arith.constant 0 : index
    %c0_39 = arith.constant 0 : index
    %66 = vector.load %arg14[%c0_38, %c0_39] : memref<8x128xf32, #tpu.memory_space<vmem>>, vector<8x128xf32>
    tpu.vector_store %arg14[%c0_38, %c0_39], %65 {strides = array<i32>} : memref<8x128xf32, #tpu.memory_space<vmem>>, vector<8x128xf32>,
    return
  }
  func.func @transform_0(%arg0: i32) -> (i32, i32) {
    %c0_i32 = arith.constant 0 : i32
    %c0_i32_0 = arith.constant 0 : i32
    return %arg0, %c0_i32 : i32, i32
  }
  func.func @transform_1(%arg0: i32) -> (i32, i32) {
    %c0_i32 = arith.constant 0 : i32
    %c0_i32_0 = arith.constant 0 : i32
    return %arg0, %c0_i32 : i32, i32
  }
  func.func @transform_2(%arg0: i32) -> (i32, i32) {
    %c0_i32 = arith.constant 0 : i32
    %c0_i32_0 = arith.constant 0 : i32
    %c0_i32_1 = arith.constant 0 : i32
    return %c0_i32, %c0_i32_0 : i32, i32
  }
  func.func @transform_3(%arg0: i32) -> (i32, i32) {
    %c0_i32 = arith.constant 0 : i32
    %c0_i32_0 = arith.constant 0 : i32
    %c0_i32_1 = arith.constant 0 : i32
    return %c0_i32, %c0_i32_0 : i32, i32
  }
  func.func @transform_4(%arg0: i32) -> (i32, i32) {
    %c0_i32 = arith.constant 0 : i32
    %c0_i32_0 = arith.constant 0 : i32
    %c0_i32_1 = arith.constant 0 : i32
    return %c0_i32, %c0_i32_0 : i32, i32
  }
  func.func @transform_5(%arg0: i32) -> (i32, i32) {
    %c0_i32 = arith.constant 0 : i32
    %c0_i32_0 = arith.constant 0 : i32
    %c0_i32_1 = arith.constant 0 : i32
    return %c0_i32, %c0_i32_0 : i32, i32
  }
  func.func @transform_6(%arg0: i32) -> (i32, i32) {
    %c0_i32 = arith.constant 0 : i32
    %c0_i32_0 = arith.constant 0 : i32
    %c0_i32_1 = arith.constant 0 : i32
    return %c0_i32, %c0_i32_0 : i32, i32
  }
  func.func @transform_7(%arg0: i32) -> (i32, i32) {
    %c0_i32 = arith.constant 0 : i32
    %c0_i32_0 = arith.constant 0 : i32
    %c0_i32_1 = arith.constant 0 : i32
    return %c0_i32, %c0_i32_0 : i32, i32
  }
  func.func @transform_8(%arg0: i32) -> (i32, i32) {
    %c0_i32 = arith.constant 0 : i32
    %c0_i32_0 = arith.constant 0 : i32
    %c0_i32_1 = arith.constant 0 : i32
    return %c0_i32, %c0_i32_0 : i32, i32
  }
  func.func @transform_9(%arg0: i32) -> (i32, i32) {
    %c0_i32 = arith.constant 0 : i32
    %c0_i32_0 = arith.constant 0 : i32
    %c0_i32_1 = arith.constant 0 : i32
    return %c0_i32, %c0_i32_0 : i32, i32
  }
  func.func @transform_10(%arg0: i32) -> (i32, i32) {
    %c0_i32 = arith.constant 0 : i32
    %c0_i32_0 = arith.constant 0 : i32
    %c0_i32_1 = arith.constant 0 : i32
    return %c0_i32, %c0_i32_0 : i32, i32
  }
  func.func @transform_11(%arg0: i32) -> (i32, i32) {
    %c0_i32 = arith.constant 0 : i32
    %c0_i32_0 = arith.constant 0 : i32
    %c0_i32_1 = arith.constant 0 : i32
    return %c0_i32, %c0_i32_0 : i32, i32
  }
  func.func @transform_12(%arg0: i32) -> (i32, i32) {
    %c0_i32 = arith.constant 0 : i32
    %c0_i32_0 = arith.constant 0 : i32
    %c0_i32_1 = arith.constant 0 : i32
    return %c0_i32, %c0_i32_0 : i32, i32
  }
  func.func @transform_13(%arg0: i32) -> (i32, i32) {
    %c0_i32 = arith.constant 0 : i32
    %c0_i32_0 = arith.constant 0 : i32
    return %arg0, %c0_i32 : i32, i32
  }
}

</mosaic_0001>

<bundles_post_ra>
// kernel: tpu_custom_call.1
= control target key start
LH: loop header
LB: loop body
LE: loop exit
PB: predicated region body
PF: predicated region fallthrough
CT: control target
= control target key end

     0   :  { %s1967_s0 = inlined_call_operand.vmem [shape: bf16[256,64], index: 0, kind: input, shape index: {}]   ;;  %s1968_s1 = inlined_call_operand.vmem [shape: bf16[256,4], index: 1, kind: input, shape index: {}]   ;;  %s1969_s2 = inlined_call_operand.vmem [shape: bf16[64,32], index: 2, kind: input, shape index: {}]   ;;  %s1970_s3 = inlined_call_operand.vmem [shape: bf16[4,32], index: 3, kind: input, shape index: {}]   ;;  %s1971_s4 = inlined_call_operand.vmem [shape: f32[1,32], index: 4, kind: input, shape index: {}]   ;;  %s1972_s5 = inlined_call_operand.vmem [shape: bf16[16,128], index: 5, kind: input, shape index: {}]   ;;  %s1973_s6 = inlined_call_operand.vmem [shape: bf16[32,64], index: 6, kind: input, shape index: {}]   ;;  %s1974_s7 = inlined_call_operand.vmem [shape: bf16[32,64], index: 7, kind: input, shape index: {}]   ;;  %s1975_s8 = inlined_call_operand.vmem [shape: f32[1,64], index: 8, kind: input, shape index: {}]   ;;  %s1976_s9 = inlined_call_operand.vmem [shape: f32[1,64], index: 9, kind: input, shape index: {}]   ;;  %s1977_s10 = inlined_call_operand.vmem [shape: f32[1,64], index: 10, kind: input, shape index: {}]   ;;  %s1978_s11 = inlined_call_operand.vmem [shape: bf16[64,128], index: 11, kind: input, shape index: {}]   ;;  %s1979_s12 = inlined_call_operand.vmem [shape: f32[1,128], index: 12, kind: input, shape index: {}]   ;;  %s1980_s13 = inlined_call_operand.hbm [shape: f32[16,128], index: 13, kind: output, shape index: {}]  }
   0x1   :  { %1982 = sst [smem:[#allocation7_spill]] %s1970_s3 }
   0x2   :  { %18 = vsyncpa [#allocation3], 0 }
   0x3   :  { %20 = vsyncpa [#allocation3 + $0x1], 0  ;;  %s1725_s25 = smov 0   ;;  %s1727_s26 = smov 0  }
   0x4   :  { %s1729_s27 = smov 0   ;;  %s1731_s28 = smov 0  }
   0x5 LB: > { %1983 = sst [smem:[#allocation5_spill]] %s1646_s27  ;;  %s1746_s29 = sadd.s32 4294967295, %s1650_s28   ;;  %s1650_s28 = sphi %s1731_s28, %s1992_s28   ;;  %s1646_s27 = sphi %s1729_s27, %s1989_s27   ;;  %s1642_s26 = sphi %s1727_s26, %s1991_s26   ;;  %s1638_s25 = sphi %s1725_s25, %s1990_s25  }
   0x6   : > { %s1286_s30 = sadd.s32 4294967294, %s1650_s28   ;;  %s1750_s14 = sadd.s32 1, %s1650_s28  }
   0x7   : > { %s316_s15 = sadd.s32 1, %s1646_s27  ;;  %s313_s16 = ssub.s32 %s1650_s28, %s1750_s14 }
   0x8   : > { %p326_p0 = scmp.ne.s32.totalorder %s1646_s27, %s1642_s26  ;;  %p314_p1 = scmp.eq.s32.totalorder %s313_s16, 0 }
   0x9   : > { %p327_p2 = scmp.eq.s32.totalorder %s1746_s29, 1  ;;  %p332_p3 = scmp.ne.s32.totalorder %s1642_s26, %s1638_s25 }
   0xa   : > { %p333_p4 = scmp.eq.s32.totalorder %s1286_s30, 1  ;;  %p1289_p7 = scmp.ge.s32.totalorder %s1650_s28, 1 }
   0xb   : > { %s1761_s17 = scalar_select %p314_p1, %s1646_s27, %s316_s15  }
   0xc   : > { %p1763_p5 = por %p327_p2, %p326_p0  ;;  %p1767_p6 = por %p333_p4, %p332_p3 }
   0xd   : > { %1984 = sst [smem:[#allocation6_spill]] %s1761_s17  ;;  %p402_p8 = scmp.lt.s32.totalorder %s1650_s28, 3 }
   0xf   : > { %p403_p9 = pnand %p1289_p7, %p402_p8 }
  0x10   : > { %s1291_s24 = sshll.u32 (!%p403_p9), %s1746_s29, 4  ;;  %s1987_s3 = sld [smem:[#allocation7_spill]] (!%p403_p9) }
  0x11   : > { %406 = sbr.rel (%p403_p9) target bundleno = 1246 (0x4de), region = 72  ;;  %p452_p10 = scmp.lt.s32.totalorder (!%p403_p9), %s1291_s24, 31 }
  0x12   : > { %s448_s20 = sand.u32 (!%p403_p9), 1, %s1642_s26   ;;  %s1349_s30 = sshll.u32 (!%p403_p9), %s1746_s29, 7 }
  0x13   : > { %s1926_s17 = scalar_lea.hbm (!%p403_p9), %s1980_s13, %s1349_s30  ;;  %s1654_s29 = smov (!%p403_p9), [#allocation2]  }
  0x16   : > { %v1525_v0 = vld [vmem:[%s1969_s2 + $0x18] sm:$0xff]   ;;  %vm570_vm0 = vcmask 1041408   ;;  %v1526_v1 = vld [vmem:[%s1969_s2 + $0x10] sm:$0xff]   ;;  %v504_v2 = vld [vmem:[%s1987_s3] sm:$0x3]  ;;  %s1994_s24 = smov (!%p452_p10, %s1291_s24), 31 }
  0x17   : > { %1411 = vmatprep.subr.bf16.mxu1 %v1525_v0  ;;  %1483 = vmatprep.subr.msk.bf16.mxu0 %vm570_vm0, %v504_v2  ;;  %v572_v3 = vsel %vm570_vm0, %v504_v2, 0  ;;  %v1527_v4 = vld [vmem:[%s1969_s2 + $0x8] sm:$0xff]   ;;  %vm545_vm1 = vcmask 31744   ;;  %s1292_s21 = sshll.u32 %s1994_s24, 2  ;;  %v1530_v5 = vld [vmem:[%s1969_s2] sm:$0xff]   ;;  %vm735_vm2 = vcmask 523264  }
  0x18   : > { %1412 = vmatpush3.bf16.msra.mxu1 %v1525_v0  ;;  %1394 = vmatpush3.bf16.msra.mxu0 %v572_v3  ;;  %s1792_s3 = scalar_lea.vmem %s1968_s1, %s1292_s21  ;;  %s1797_s16 = scalar_lea.vmem %s1967_s0, %s1292_s21  ;;  %v1652_v22 = vmov 0.0   ;;  %vm1653_vm3 = vmmov 0   ;;  %v1546_v23 = vld [vmem:[%s1974_s7 + $0x8] sm:$0xff]   ;;  %v1547_v24 = vld [vmem:[%s1974_s7] sm:$0xff]   ;;  %vm975_vm4 = vcmask 261120  }
  0x19   : > { %1413 = vmatprep.subr.bf16.mxu1 %v1526_v1  ;;  %v1528_v6 = vld [vmem:[%s1792_s3] sm:$0xff]   ;;  %v1529_v7 = vld [vmem:[%s1792_s3 + $0x8] sm:$0xff]   ;;  %v1533_v9 = vld [vmem:[%s1792_s3 + $0x10] sm:$0xff]   ;;  %1455 = vmatprep.subr.bf16.mxu0 %v1652_v22  ;;  %s1290_s21 = sshll.u32 %s448_s20, 3  ;;  %s1202_s24 = scalar_lea.sflag [#allocation3], %s448_s20 }
  0x1a   : > { %1395 = vmatprep.mubr.msk.bf16.mxu0 %vm545_vm1, %v1528_v6  ;;  %v1531_v8 = vld [vmem:[%s1797_s16] sm:$0xff]   ;;  %v1532_v10 = vld [vmem:[%s1797_s16 + $0x8] sm:$0xff]   ;;  %v1535_v11 = vld [vmem:[%s1797_s16 + $0x10] sm:$0xff]   ;;  %s450_s15 = scalar_lea.vmem [#allocation2], %s1290_s21  ;;  %s1594_s21 = sshll.u32 %s1654_s29, 4  ;;  %s1595_s21 = int_to_ptr.vmem [resolvable:$false] %s1594_s21 }
  0x1b   : > { %1396 = vmatmul.mubr.msk.bf16.vlgmr.msra.gmra.mxu0 %vm545_vm1, %v1529_v7  ;;  %1419 = vmatprep.mubr.msk.bf16.mxu1 %vm735_vm2, %v1531_v8  ;;  %v1534_v12 = vld [vmem:[%s1792_s3 + $0x18] sm:$0xff]   ;;  %v1537_v13 = vld [vmem:[%s1792_s3 + $0x20] sm:$0xff]   ;;  %v1538_v15 = vld [vmem:[%s1792_s3 + $0x28] sm:$0xff]   ;;  %s1596_s23 = scalar_lea.vmem %s1595_s21, 256 }
  0x1c   : > { %1414 = vmatpush3.bf16.msra.mxu1 %v1526_v1  ;;  %1399 = vmatprep.mubr.msk.bf16.mxu0 %vm545_vm1, %v1533_v9  ;;  %v1536_v14 = vld [vmem:[%s1797_s16 + $0x18] sm:$0xff]   ;;  %v1539_v16 = vld [vmem:[%s1797_s16 + $0x20] sm:$0xff]   ;;  %v1541_v17 = vld [vmem:[%s1792_s3 + $0x30] sm:$0xff]  }
  0x1d   : > { %1415 = vmatprep.subr.bf16.mxu1 %v1527_v4  ;;  %v1540_v18 = vld [vmem:[%s1797_s16 + $0x28] sm:$0xff]   ;;  %v1543_v19 = vld [vmem:[%s1797_s16 + $0x30] sm:$0xff]   ;;  %v1542_v20 = vld [vmem:[%s1792_s3 + $0x38] sm:$0xff]   ;;  %1456 = vmatpush3.bf16.msra.mxu0 %v1546_v23 }
  0x1e   : > { %v1544_v21 = vld [vmem:[%s1797_s16 + $0x38] sm:$0xff]   ;;  %1457 = vmatprep.subr.bf16.mxu0 %v1652_v22  ;;  %v1331_v55 = vld [vmem:[%s1971_s4] ss:$0 sm:$0xff]  ;;  %s1215_s16 = sshll.u32 %s450_s15, 4  ;;  %s1928_s16 = int_to_ptr.vmem [resolvable:$true] %s1215_s16 }
  0x1f   : > { %s1590_s22 = scalar_lea.vmem %s1928_s16, 128  ;;  %p1597_p0 = scmp.lt.s32.totalorder %s1928_s16, %s1595_s21 }
  0x20   : > { %1416 = vmatpush3.bf16.msra.mxu1 %v1527_v4  ;;  %p1591_p11 = scmp.ne.s32.totalorder %s1928_s16, %s1590_s22  ;;  %p1598_p1 = scmp.lt.s32.totalorder %s1596_s23, %s1590_s22 }
  0x21   : > { %1417 = vmatprep.subr.bf16.mxu1 %v1530_v5  ;;  %1458 = vmatpush3.bf16.msra.mxu0 %v1547_v24 }
  0x22   : > { %1471 = vmatprep.subr.bf16.mxu0 %v1652_v22  ;;  %p1592_p12 = pnand %p1591_p11, %p1763_p5  ;;  %p1599_p2 = por %p1598_p1, %p1597_p0 }
  0x23   : > { %1400 = vmatmul.mubr.msk.bf16.gmra.mxu0 %vm545_vm1, %v1534_v12 }
  0x24   : > { %1418 = vmatpush3.bf16.msra.mxu1 %v1530_v5  ;;  %1403 = vmatprep.mubr.msk.bf16.mxu0 %vm545_vm1, %v1537_v13  ;;  %p1593_p13 = pneg %p1592_p12 }
  0x25   : > { %1435 = vmatprep.subr.bf16.mxu1 %v1652_v22 }
  0x26   : > { %p1600_p3 = pnand %p1599_p2, %p1593_p13 }
  0x27   : > { %1420 = vmatmul.mubr.msk.bf16.vlgmr.msra.gmra.mxu1 %vm735_vm2, %v1532_v10 }
  0x28   : > { %1423 = vmatprep.mubr.msk.bf16.mxu1 %vm735_vm2, %v1535_v11 }
  0x2b   : > { %1404 = vmatmul.mubr.msk.bf16.gmra.mxu0 %vm545_vm1, %v1538_v15 }
  0x2c   : > { %1407 = vmatprep.mubr.msk.bf16.mxu0 %vm545_vm1, %v1541_v17 }
  0x2f   : > { %1424 = vmatmul.mubr.msk.bf16.gmra.mxu1 %vm735_vm2, %v1536_v14 }
  0x30   : > { %1427 = vmatprep.mubr.msk.bf16.mxu1 %vm735_vm2, %v1539_v16 }
  0x33   : > { %1408 = vmatmul.mubr.msk.bf16.gmra.mxu0 %vm545_vm1, %v1542_v20 }
  0x34   : > { %1459 = vmatprep.mubr.msk.bf16.mxu0 %vm1653_vm3, %v1652_v22 }
  0x37   : > { %1428 = vmatmul.mubr.msk.bf16.gmra.mxu1 %vm735_vm2, %v1540_v18 }
  0x38   : > { %1431 = vmatprep.mubr.msk.bf16.mxu1 %vm735_vm2, %v1543_v19 }
  0x3f   : > { %1432 = vmatmul.mubr.msk.bf16.gmra.mxu1 %vm735_vm2, %v1544_v21 }
  0x40   : > { %1451 = vmatprep.mubr.msk.bf16.mxu1 %vm1653_vm3, %v1652_v22 }
  0xdb   : > { %v1845_v25 = vpop.f32.mrf.mxu0 }
  0xdd   : > { %v1847_v26 = vpop.f32.mrf.mxu0 }
  0xdf   : > { %v1849_v27 = vpop.f32.mrf.mxu0 }
  0xe1   : > { %v1851_v28 = vpop.f32.mrf.mxu0 }
  0xe3   : > { %v1401_v30 = vpop.f32.mrf.mxu0 }
  0xe5   : > { %v624_v32 = vpop.f32.mrf.mxu0 }
  0xe7   : > { %v1853_v29 = vpop.f32.mrf.mxu1  ;;  %v1402_v34 = vpop.f32.mrf.mxu0 }
  0xe8   : > { %v803_v23 = vadd.f32 %v1853_v29, %v1845_v25 }
  0xe9   : > { %v1855_v31 = vpop.f32.mrf.mxu1  ;;  %v627_v36 = vpop.f32.mrf.mxu0 }
  0xeb   : > { %v1422_v33 = vpop.f32.mrf.mxu1  ;;  %v1405_v38 = vpop.f32.mrf.mxu0 }
  0xec   : > { %v806_v18 = vadd.f32 %v1422_v33, %v1849_v27  ;;  %v866_v33 = vadd.f32 %v1331_v55, %v803_v23 }
  0xed   : > { %v1857_v35 = vpop.f32.mrf.mxu1  ;;  %v640_v40 = vpop.f32.mrf.mxu0 }
  0xef   : > { %v1425_v37 = vpop.f32.mrf.mxu1  ;;  %v1406_v42 = vpop.f32.mrf.mxu0 }
  0xf0   : > { %v819_v10 = vadd.f32 %v1425_v37, %v1401_v30  ;;  %v795_v37 = vadd.f32 %v1855_v31, %v1847_v26 }
  0xf1   : > { %v810_v39 = vpop.f32.mrf.mxu1  ;;  %v643_v44 = vpop.f32.mrf.mxu0 }
  0xf2   : > { %v870_v15 = vadd.f32 %v1331_v55, %v819_v10  ;;  %v811_v16 = vadd.f32 %v810_v39, %v624_v32  ;;  %v798_v32 = vadd.f32 %v1857_v35, %v1851_v28 }
  0xf3   : > { %v1426_v41 = vpop.f32.mrf.mxu1  ;;  %v1409_v46 = vpop.f32.mrf.mxu0 }
  0xf4   : > { %v822_v8 = vadd.f32 %v1426_v41, %v1402_v34  ;;  %v868_v24 = vadd.f32 %v1331_v55, %v811_v16  ;;  %v867_v34 = vadd.f32 %v1331_v55, %v806_v18  ;;  %v865_v29 = vadd.f32 %v1331_v55, %v798_v32  ;;  %v1550_v18 = vld [vmem:[%s1978_s11 + $0x18] sm:$0xff]   ;;  %v1340_v32 = vld [vmem:[%s1976_s9] ss:$0 sm:$0xff] }
  0xf5   : > { %v813_v43 = vpop.f32.mrf.mxu1  ;;  %v656_v49 = vpop.f32.mrf.mxu0 }
  0xf6   : > { %v871_v12 = vadd.f32 %v1331_v55, %v822_v8  ;;  %v814_v13 = vadd.f32 %v813_v43, %v627_v36 }
  0xf7   : > { %v1429_v45 = vpop.f32.mrf.mxu1  ;;  %v1410_v53 = vpop.f32.mrf.mxu0 }
  0xf8   : > { %v835_v1 = vadd.f32 %v1429_v45, %v1405_v38  ;;  %v869_v19 = vadd.f32 %v1331_v55, %v814_v13 }
  0xf9   : > { %v826_v47 = vpop.f32.mrf.mxu1  ;;  %v659_v60 = vpop.f32.mrf.mxu0 }
  0xfa   : > { %v874_v6 = vadd.f32 %v1331_v55, %v835_v1  ;;  %v827_v7 = vadd.f32 %v826_v47, %v640_v40  ;;  %v864_v40 = vadd.f32 %v1331_v55, %v795_v37 }
  0xfb   : > { %v1430_v48 = vpop.f32.mrf.mxu1 }
  0xfc   : > { %v838_v62 = vadd.f32 %v1430_v48, %v1406_v42  ;;  %v872_v11 = vadd.f32 %v1331_v55, %v827_v7 }
  0xfd   : > { %v829_v50 = vpop.f32.mrf.mxu1 }
  0xfe   : > { %v875_v4 = vadd.f32 %v1331_v55, %v838_v62  ;;  %v830_v5 = vadd.f32 %v829_v50, %v643_v44 }
  0xff   : > { %v1433_v51 = vpop.f32.mrf.mxu1 }
 0x100   : > { %v851_v52 = vadd.f32 %v1433_v51, %v1409_v46  ;;  %v873_v9 = vadd.f32 %v1331_v55, %v830_v5  ;;  %v1545_v51 = vld [vmem:[%s1972_s5] sm:$0xff]  }
 0x101   : > { %v842_v54 = vpop.f32.mrf.mxu1 }
 0x102   : > { %v878_v56 = vadd.f32 %v1331_v55, %v851_v52  ;;  %v843_v58 = vadd.f32 %v842_v54, %v656_v49  ;;  %v1548_v52 = vld [vmem:[%s1973_s6 + $0x8] sm:$0xff]  }
 0x103   : > { %v1434_v57 = vpop.f32.mrf.mxu1 }
 0x104   : > { %v854_v59 = vadd.f32 %v1434_v57, %v1410_v53  ;;  %1554 = vtanh.f32 %v878_v56  ;;  %v876_v2 = vadd.f32 %v1331_v55, %v843_v58  ;;  %v1549_v53 = vld [vmem:[%s1973_s6] sm:$0xff]  }
 0x105   : > { %v845_v61 = vpop.f32.mrf.mxu1 }
 0x106   : > { %v879_v63 = vadd.f32 %v1331_v55, %v854_v59  ;;  %v846_v0 = vadd.f32 %v845_v61, %v659_v60 }
 0x108   : > { %1556 = vtanh.f32 %v879_v63  ;;  %v877_v3 = vadd.f32 %v1331_v55, %v846_v0  ;;  %v1339_v63 = vld [vmem:[%s1975_s8] ss:$0 sm:$0xff] }
 0x10a   : > { %1558 = vtanh.f32 %v877_v3 }
 0x10b   : > { %1560 = vtanh.f32 %v876_v2 }
 0x10c   : > { %1562 = vtanh.f32 %v875_v4 }
 0x10d   : > { %1564 = vtanh.f32 %v874_v6 }
 0x10e   : > { %1566 = vtanh.f32 %v873_v9 }
 0x10f   : > { %1568 = vtanh.f32 %v872_v11 }
 0x110   : > { %1570 = vtanh.f32 %v871_v12 }
 0x111   : > { %v1555_v14 = vpop.eup %1554  ;;  %1572 = vtanh.f32 %v870_v15 }
 0x112   : > { %1574 = vtanh.f32 %v869_v19  ;;  %v1551_v19 = vld [vmem:[%s1978_s11 + $0x10] sm:$0xff]  }
 0x113   : > { %1576 = vtanh.f32 %v868_v24 }
 0x114   : > { %1578 = vtanh.f32 %v867_v34 }
 0x115   : > { %v1557_v17 = vpop.eup %1556  ;;  %1580 = vtanh.f32 %v866_v33 }
 0x116   : > { %v905_v20 = vpack.c.bf16 %v1557_v17, %v1555_v14  ;;  %1582 = vtanh.f32 %v865_v29 }
 0x117   : > { %v1559_v21 = vpop.eup %1558  ;;  %1584 = vtanh.f32 %v864_v40 }
 0x118   : > { %1436 = vmatpush3.bf16.msra.mxu1 %v905_v20  ;;  %v1561_v30 = vpop.eup %1560  ;;  %v1552_v20 = vld [vmem:[%s1978_s11 + $0x8] sm:$0xff]  }
 0x119   : > { %1437 = vmatprep.subr.bf16.mxu1 %v1652_v22  ;;  %v904_v36 = vpack.c.bf16 %v1559_v21, %v1561_v30  ;;  %v1563_v27 = vpop.eup %1562  ;;  %v1553_v21 = vld [vmem:[%s1978_s11] sm:$0xff]  }
 0x11a   : > { %v1565_v25 = vpop.eup %1564 }
 0x11b   : > { %v903_v38 = vpack.c.bf16 %v1563_v27, %v1565_v25  ;;  %v1567_v39 = vpop.eup %1566  ;;  %v1341_v27 = vld [vmem:[%s1977_s10] ss:$0 sm:$0xff] }
 0x11c   : > { %1438 = vmatpush3.bf16.msra.mxu1 %v904_v36  ;;  %v1569_v28 = vpop.eup %1568 }
 0x11d   : > { %1439 = vmatprep.subr.bf16.mxu1 %v1652_v22  ;;  %v902_v35 = vpack.c.bf16 %v1567_v39, %v1569_v28  ;;  %v1571_v41 = vpop.eup %1570 }
 0x11e   : > { %v1573_v26 = vpop.eup %1572 }
 0x11f   : > { %v901_v31 = vpack.c.bf16 %v1571_v41, %v1573_v26  ;;  %v1575_v42 = vpop.eup %1574 }
 0x120   : > { %1440 = vmatpush3.bf16.msra.mxu1 %v903_v38  ;;  %v1577_v43 = vpop.eup %1576 }
 0x121   : > { %1441 = vmatprep.subr.bf16.mxu1 %v1652_v22  ;;  %v900_v44 = vpack.c.bf16 %v1575_v42, %v1577_v43  ;;  %v1579_v45 = vpop.eup %1578 }
 0x122   : > { %v1581_v46 = vpop.eup %1580 }
 0x123   : > { %v899_v47 = vpack.c.bf16 %v1579_v45, %v1581_v46  ;;  %v1583_v48 = vpop.eup %1582 }
 0x124   : > { %1442 = vmatpush3.bf16.msra.mxu1 %v902_v35  ;;  %v1585_v49 = vpop.eup %1584 }
 0x125   : > { %1443 = vmatprep.subr.bf16.mxu1 %v1652_v22  ;;  %v898_v50 = vpack.c.bf16 %v1583_v48, %v1585_v49 }
 0x128   : > { %1444 = vmatpush3.bf16.msra.mxu1 %v901_v31 }
 0x129   : > { %1445 = vmatprep.subr.bf16.mxu1 %v1652_v22 }
 0x12c   : > { %1446 = vmatpush3.bf16.msra.mxu1 %v900_v44 }
 0x12d   : > { %1447 = vmatprep.subr.bf16.mxu1 %v1652_v22 }
 0x130   : > { %1448 = vmatpush3.bf16.msra.mxu1 %v899_v47 }
 0x131   : > { %1449 = vmatprep.subr.bf16.mxu1 %v1652_v22 }
 0x134   : > { %1450 = vmatpush3.bf16.msra.mxu1 %v898_v50 }
 0x135   : > { %1463 = vmatprep.subr.bf16.mxu1 %v1652_v22 }
 0x137   : > { %1452 = vmatmul.mubr.bf16.vlgmr.msra.gmra.mxu1 %v1545_v51 }
 0x138   : > { %1464 = vmatpush3.bf16.msra.mxu1 %v1548_v52  ;;  %1467 = vmatprep.mubr.msk.bf16.mxu1 %vm1653_vm3, %v1652_v22 }
 0x139   : > { %1465 = vmatprep.subr.bf16.mxu1 %v1652_v22 }
 0x13c   : > { %1466 = vmatpush3.bf16.msra.mxu1 %v1549_v53 }
 0x1f7   : > { %v946_v54 = vpop.f32.mrf.mxu1 }
 0x1f8   : > { %v953_v55 = vpack.c.bf16 %v946_v54, %v946_v54 }
 0x1f9   : > { %v1453_v56 = vpop.f32.mrf.mxu1 }
 0x1fa   : > { %1468 = vmatmul.mubr.msk.bf16.vlgmr.msra.gmra.mxu1 %vm975_vm4, %v953_v55 }
 0x1fb   : > { %v949_v57 = vpop.f32.mrf.mxu1 }
 0x1fc   : > { %v954_v58 = vpack.c.bf16 %v949_v57, %v949_v57 }
 0x1fd   : > { %v1454_v59 = vpop.f32.mrf.mxu1 }
 0x1fe   : > { %1460 = vmatmul.mubr.msk.bf16.vlgmr.msra.gmra.mxu0 %vm975_vm4, %v954_v58 }
 0x1ff   : > { %1479 = vmatprep.mubr.msk.bf16.mxu0 %vm1653_vm3, %v1652_v22  ;;  %1472 = vmatpush3.bf16.msra.mxu0 %v1550_v18 }
 0x200   : > { %1473 = vmatprep.subr.bf16.mxu0 %v1652_v22 }
 0x203   : > { %1474 = vmatpush3.bf16.msra.mxu0 %v1551_v19 }
 0x204   : > { %1475 = vmatprep.subr.bf16.mxu0 %v1652_v22 }
 0x207   : > { %1476 = vmatpush3.bf16.msra.mxu0 %v1552_v20 }
 0x208   : > { %1477 = vmatprep.subr.bf16.mxu0 %v1652_v22  ;;  %v1342_v22 = vld [vmem:[%s1979_s12] ss:$0 sm:$0xff] }
 0x20b   : > { %1478 = vmatpush3.bf16.msra.mxu0 %v1553_v21 }
 0x2ba   : > { %v1068_v60 = vpop.f32.mrf.mxu1 }
 0x2bc   : > { %v1469_v61 = vpop.f32.mrf.mxu1 }
 0x2be   : > { %v1013_v62 = vpop.f32.mrf.mxu0  ;;  %v1071_v0 = vpop.f32.mrf.mxu1 }
 0x2bf   : > { %v1069_v1 = vadd.f32 %v1068_v60, %v1013_v62 }
 0x2c0   : > { %v1461_v2 = vpop.f32.mrf.mxu0  ;;  %v1470_v3 = vpop.f32.mrf.mxu1 }
 0x2c1   : > { %v1081_v4 = vadd.f32 %v1339_v63, %v1069_v1 }
 0x2c2   : > { %v1016_v5 = vpop.f32.mrf.mxu0 }
 0x2c3   : > { %v1083_v6 = vmul.f32 0.70710677, %v1081_v4  ;;  %v1082_v9 = vmul.f32 0.5, %v1081_v4 }
 0x2c4   : > { %v1462_v7 = vpop.f32.mrf.mxu0 }
 0x2c5   : > { %1586 = verf.f32 %v1083_v6 }
 0x2d2   : > { %v1587_v8 = vpop.eup %1586 }
 0x2d3   : > { %v1085_v10 = vadd.f32 1.0, %v1587_v8 }
 0x2d5   : > { %v1086_v11 = vmul.f32 %v1085_v10, %v1082_v9 }
 0x2d7   : > { %v1087_v12 = vsel %vm735_vm2, %v1086_v11, 0.0 }
 0x2d8   : > { %1088 = vadd.xlane.f32.xlu0 %v1087_v12 }
 0x361   : > { %v1089_v13 = vpop.xlane.xlu0 %1088 }
 0x362   : > { %v1091_v14 = vmul.f32 0.015625, %v1089_v13 }
 0x364   : > { %v1092_v15 = vsub.f32 %v1086_v11, %v1091_v14 }
 0x366   : > { %v1093_v16 = vmul.f32 %v1092_v15, %v1092_v15 }
 0x368   : > { %v1094_v17 = vsel %vm735_vm2, %v1093_v16, 0.0 }
 0x369   : > { %1095 = vadd.xlane.f32.xlu0 %v1094_v17 }
 0x3f2   : > { %v1096_v23 = vpop.xlane.xlu0 %1095 }
 0x3f3   : > { %v1097_v24 = vmul.f32 0.015625, %v1096_v23 }
 0x3f5   : > { %v1098_v30 = vadd.f32 1e-12, %v1097_v24 }
 0x3f7   : > { %1588 = vrsqrt.f32 %v1098_v30 }
 0x404   : > { %v1589_v34 = vpop.eup %1588 }
 0x405   : > { %v1100_v36 = vmul.f32 %v1589_v34, %v1092_v15 }
 0x407   : > { %v1108_v33 = vmul.f32 %v1340_v32, %v1100_v36 }
 0x409   : > { %v1116_v37 = vadd.f32 %v1341_v27, %v1108_v33 }
 0x40b   : > { %v1117_v25 = vpack.c.bf16 %v1116_v37, %v1116_v37 }
 0x40d   : > { %1480 = vmatmul.mubr.msk.bf16.vlgmr.msra.gmra.mxu0 %vm735_vm2, %v1117_v25 }
 0x4cd   : > { %v1194_v29 = vpop.f32.mrf.mxu0 }
 0x4ce   : > { %v1195_v38 = vadd.f32 %v1342_v22, %v1194_v29 }
 0x4cf   : > { %v1481_v39 = vpop.f32.mrf.mxu0 }
 0x4d0   : > { %1200 = vst [vmem:[%s450_s15] sm:$0xff] %v1195_v38 }
 0x4d1   : > { %v1197_v40 = vpop.f32.mrf.mxu0 }
 0x4d2   : > { %1603 = shalt.err (!%p1600_p3)
}
 0x4d3   : > { %s1604_s30 = scalar_lea.hbm %s1926_s17, 128  ;;  %s1608_s3 = scalar_lea.hbm %s1980_s13, 256 }
 0x4d4   : > { %p1605_p4 = scmp.ne.s32.totalorder %s1926_s17, %s1604_s30  ;;  %p1609_p9 = scmp.lt.s32.totalorder %s1926_s17, %s1980_s13 }
 0x4d5   : > { %p1610_p10 = scmp.lt.s32.totalorder %s1608_s3, %s1604_s30 }
 0x4d6   : > { %p1606_p7 = pnand %p1605_p4, %p1763_p5 }
 0x4d7   : > { %p1611_p11 = por %p1610_p10, %p1609_p9 }
 0x4d8   : > { %p1607_p8 = pneg %p1606_p7 }
 0x4da   : > { %p1612_p12 = pnand %p1611_p11, %p1607_p8 }
 0x4dc   : > { %1615 = shalt.err (!%p1612_p12)
}
 0x4dd   : > { %1484 = dma.vmem_to_hbm [thread:$0]  (%p1763_p5), %s1928_s16, 128, %s1926_s17, %s1202_s24   ;;  %v1482_v28 = vpop.f32.mrf.mxu0 }
 0x4de PF: > { %p1490_p13 = scmp.ge.s32.totalorder %s1650_s28, 2  ;;  %s1227_s22 = sand.u32 1, %s1638_s25  }
 0x4df   : > { %s1228_s21 = scalar_lea.sflag [#allocation3], %s1227_s22 }
 0x4e0   : > { %p1487_p0 = pnand %p1490_p13, %p1767_p6 }
 0x4e2   : > { %p1488_p1 = pneg %p1487_p0 }
 0x4e4   : > { %1633 = dma.done.wait (%p1488_p1), %s1228_s21, 128  }
 0x4e5   : > { %1635 = vsyncadd (%p1488_p1), %s1228_s21, 4294967168  ;;  %s1988_s23 = sld [smem:[#allocation5_spill]]  ;;  %p23_p2 = scmp.ge.s32.totalorder %s1750_s14, 4  }
 0x4e6   : > { %s1989_s27 = sld [smem:[#allocation6_spill]]  ;;  %s1990_s25 = smov %s1642_s26 }
 0x4e7   : > { %s1992_s28 = smov %s1750_s14  ;;  %25 = sbr.rel (!%p23_p2) target bundleno = 5 (0x5), region = 110 }
 0x4eb   : > { %s1991_s26 = smov %s1988_s23 }
 0x4ec   :  { %1233 = vsyncpa [#allocation3], 1 }
 0x4ed   :  { %1235 = vsyncpa [#allocation3 + $0x1], 1 }

// kernel: tpu_custom_call.1
= control target key start
LH: loop header
LB: loop body
LE: loop exit
PB: predicated region body
PF: predicated region fallthrough
CT: control target
= control target key end

     0   :  { %s1967_s0 = inlined_call_operand.vmem [shape: bf16[256,64], index: 0, kind: input, shape index: {}]   ;;  %s1968_s1 = inlined_call_operand.vmem [shape: bf16[256,4], index: 1, kind: input, shape index: {}]   ;;  %s1969_s2 = inlined_call_operand.vmem [shape: bf16[64,32], index: 2, kind: input, shape index: {}]   ;;  %s1970_s3 = inlined_call_operand.vmem [shape: bf16[4,32], index: 3, kind: input, shape index: {}]   ;;  %s1971_s4 = inlined_call_operand.vmem [shape: f32[1,32], index: 4, kind: input, shape index: {}]   ;;  %s1972_s5 = inlined_call_operand.vmem [shape: bf16[16,128], index: 5, kind: input, shape index: {}]   ;;  %s1973_s6 = inlined_call_operand.vmem [shape: bf16[32,64], index: 6, kind: input, shape index: {}]   ;;  %s1974_s7 = inlined_call_operand.vmem [shape: bf16[32,64], index: 7, kind: input, shape index: {}]   ;;  %s1975_s8 = inlined_call_operand.vmem [shape: f32[1,64], index: 8, kind: input, shape index: {}]   ;;  %s1976_s9 = inlined_call_operand.vmem [shape: f32[1,64], index: 9, kind: input, shape index: {}]   ;;  %s1977_s10 = inlined_call_operand.vmem [shape: f32[1,64], index: 10, kind: input, shape index: {}]   ;;  %s1978_s11 = inlined_call_operand.vmem [shape: bf16[64,128], index: 11, kind: input, shape index: {}]   ;;  %s1979_s12 = inlined_call_operand.vmem [shape: f32[1,128], index: 12, kind: input, shape index: {}]   ;;  %s1980_s13 = inlined_call_operand.hbm [shape: f32[16,128], index: 13, kind: output, shape index: {}]  }
   0x1   :  { %1982 = sst [smem:[#allocation7_spill]] %s1970_s3 }
   0x2   :  { %18 = vsyncpa [#allocation3], 0 }
   0x3   :  { %20 = vsyncpa [#allocation3 + $0x1], 0  ;;  %s1725_s25 = smov 0   ;;  %s1727_s26 = smov 0  }
   0x4   :  { %s1729_s27 = smov 0   ;;  %s1731_s28 = smov 0  }
   0x5 LB: > { %1983 = sst [smem:[#allocation5_spill]] %s1646_s27  ;;  %s1746_s29 = sadd.s32 4294967295, %s1650_s28   ;;  %s1650_s28 = sphi %s1731_s28, %s1992_s28   ;;  %s1646_s27 = sphi %s1729_s27, %s1989_s27   ;;  %s1642_s26 = sphi %s1727_s26, %s1991_s26   ;;  %s1638_s25 = sphi %s1725_s25, %s1990_s25  }
   0x6   : > { %s1286_s30 = sadd.s32 4294967294, %s1650_s28   ;;  %s1750_s14 = sadd.s32 1, %s1650_s28  }
   0x7   : > { %s316_s15 = sadd.s32 1, %s1646_s27  ;;  %s313_s16 = ssub.s32 %s1650_s28, %s1750_s14 }
   0x8   : > { %p326_p0 = scmp.ne.s32.totalorder %s1646_s27, %s1642_s26  ;;  %p314_p1 = scmp.eq.s32.totalorder %s313_s16, 0 }
   0x9   : > { %p327_p2 = scmp.eq.s32.totalorder %s1746_s29, 1  ;;  %p332_p3 = scmp.ne.s32.totalorder %s1642_s26, %s1638_s25 }
   0xa   : > { %p333_p4 = scmp.eq.s32.totalorder %s1286_s30, 1  ;;  %p1289_p7 = scmp.ge.s32.totalorder %s1650_s28, 1 }
   0xb   : > { %s1761_s17 = scalar_select %p314_p1, %s1646_s27, %s316_s15  }
   0xc   : > { %p1763_p5 = por %p327_p2, %p326_p0  ;;  %p1767_p6 = por %p333_p4, %p332_p3 }
   0xd   : > { %1984 = sst [smem:[#allocation6_spill]] %s1761_s17  ;;  %p402_p8 = scmp.lt.s32.totalorder %s1650_s28, 3 }
   0xf   : > { %p403_p9 = pnand %p1289_p7, %p402_p8 }
  0x10   : > { %s1291_s24 = sshll.u32 (!%p403_p9), %s1746_s29, 4  ;;  %s1987_s3 = sld [smem:[#allocation7_spill]] (!%p403_p9) }
  0x11   : > { %406 = sbr.rel (%p403_p9) target bundleno = 1246 (0x4de), region = 72  ;;  %p452_p10 = scmp.lt.s32.totalorder (!%p403_p9), %s1291_s24, 31 }
  0x12   : > { %s448_s20 = sand.u32 (!%p403_p9), 1, %s1642_s26   ;;  %s1349_s30 = sshll.u32 (!%p403_p9), %s1746_s29, 7 }
  0x13   : > { %s1926_s17 = scalar_lea.hbm (!%p403_p9), %s1980_s13, %s1349_s30  ;;  %s1654_s29 = smov (!%p403_p9), [#allocation2]  }
  0x16   : > { %v1525_v0 = vld [vmem:[%s1969_s2 + $0x18] sm:$0xff]   ;;  %vm570_vm0 = vcmask 1041408   ;;  %v1526_v1 = vld [vmem:[%s1969_s2 + $0x10] sm:$0xff]   ;;  %v504_v2 = vld [vmem:[%s1987_s3] sm:$0x3]  ;;  %s1994_s24 = smov (!%p452_p10, %s1291_s24), 31 }
  0x17   : > { %1411 = vmatprep.subr.bf16.mxu1 %v1525_v0  ;;  %1483 = vmatprep.subr.msk.bf16.mxu0 %vm570_vm0, %v504_v2  ;;  %v572_v3 = vsel %vm570_vm0, %v504_v2, 0  ;;  %v1527_v4 = vld [vmem:[%s1969_s2 + $0x8] sm:$0xff]   ;;  %vm545_vm1 = vcmask 31744   ;;  %s1292_s21 = sshll.u32 %s1994_s24, 2  ;;  %v1530_v5 = vld [vmem:[%s1969_s2] sm:$0xff]   ;;  %vm735_vm2 = vcmask 523264  }
  0x18   : > { %1412 = vmatpush3.bf16.msra.mxu1 %v1525_v0  ;;  %1394 = vmatpush3.bf16.msra.mxu0 %v572_v3  ;;  %s1792_s3 = scalar_lea.vmem %s1968_s1, %s1292_s21  ;;  %s1797_s16 = scalar_lea.vmem %s1967_s0, %s1292_s21  ;;  %v1652_v22 = vmov 0.0   ;;  %vm1653_vm3 = vmmov 0   ;;  %v1546_v23 = vld [vmem:[%s1974_s7 + $0x8] sm:$0xff]   ;;  %v1547_v24 = vld [vmem:[%s1974_s7] sm:$0xff]   ;;  %vm975_vm4 = vcmask 261120  }
  0x19   : > { %1413 = vmatprep.subr.bf16.mxu1 %v1526_v1  ;;  %v1528_v6 = vld [vmem:[%s1792_s3] sm:$0xff]   ;;  %v1529_v7 = vld [vmem:[%s1792_s3 + $0x8] sm:$0xff]   ;;  %v1533_v9 = vld [vmem:[%s1792_s3 + $0x10] sm:$0xff]   ;;  %1455 = vmatprep.subr.bf16.mxu0 %v1652_v22  ;;  %s1290_s21 = sshll.u32 %s448_s20, 3  ;;  %s1202_s24 = scalar_lea.sflag [#allocation3], %s448_s20 }
  0x1a   : > { %1395 = vmatprep.mubr.msk.bf16.mxu0 %vm545_vm1, %v1528_v6  ;;  %v1531_v8 = vld [vmem:[%s1797_s16] sm:$0xff]   ;;  %v1532_v10 = vld [vmem:[%s1797_s16 + $0x8] sm:$0xff]   ;;  %v1535_v11 = vld [vmem:[%s1797_s16 + $0x10] sm:$0xff]   ;;  %s450_s15 = scalar_lea.vmem [#allocation2], %s1290_s21  ;;  %s1594_s21 = sshll.u32 %s1654_s29, 4  ;;  %s1595_s21 = int_to_ptr.vmem [resolvable:$false] %s1594_s21 }
  0x1b   : > { %1396 = vmatmul.mubr.msk.bf16.vlgmr.msra.gmra.mxu0 %vm545_vm1, %v1529_v7  ;;  %1419 = vmatprep.mubr.msk.bf16.mxu1 %vm735_vm2, %v1531_v8  ;;  %v1534_v12 = vld [vmem:[%s1792_s3 + $0x18] sm:$0xff]   ;;  %v1537_v13 = vld [vmem:[%s1792_s3 + $0x20] sm:$0xff]   ;;  %v1538_v15 = vld [vmem:[%s1792_s3 + $0x28] sm:$0xff]   ;;  %s1596_s23 = scalar_lea.vmem %s1595_s21, 256 }
  0x1c   : > { %1414 = vmatpush3.bf16.msra.mxu1 %v1526_v1  ;;  %1399 = vmatprep.mubr.msk.bf16.mxu0 %vm545_vm1, %v1533_v9  ;;  %v1536_v14 = vld [vmem:[%s1797_s16 + $0x18] sm:$0xff]   ;;  %v1539_v16 = vld [vmem:[%s1797_s16 + $0x20] sm:$0xff]   ;;  %v1541_v17 = vld [vmem:[%s1792_s3 + $0x30] sm:$0xff]  }
  0x1d   : > { %1415 = vmatprep.subr.bf16.mxu1 %v1527_v4  ;;  %v1540_v18 = vld [vmem:[%s1797_s16 + $0x28] sm:$0xff]   ;;  %v1543_v19 = vld [vmem:[%s1797_s16 + $0x30] sm:$0xff]   ;;  %v1542_v20 = vld [vmem:[%s1792_s3 + $0x38] sm:$0xff]   ;;  %1456 = vmatpush3.bf16.msra.mxu0 %v1546_v23 }
  0x1e   : > { %v1544_v21 = vld [vmem:[%s1797_s16 + $0x38] sm:$0xff]   ;;  %1457 = vmatprep.subr.bf16.mxu0 %v1652_v22  ;;  %v1331_v55 = vld [vmem:[%s1971_s4] ss:$0 sm:$0xff]  ;;  %s1215_s16 = sshll.u32 %s450_s15, 4  ;;  %s1928_s16 = int_to_ptr.vmem [resolvable:$true] %s1215_s16 }
  0x1f   : > { %s1590_s22 = scalar_lea.vmem %s1928_s16, 128  ;;  %p1597_p0 = scmp.lt.s32.totalorder %s1928_s16, %s1595_s21 }
  0x20   : > { %1416 = vmatpush3.bf16.msra.mxu1 %v1527_v4  ;;  %p1591_p11 = scmp.ne.s32.totalorder %s1928_s16, %s1590_s22  ;;  %p1598_p1 = scmp.lt.s32.totalorder %s1596_s23, %s1590_s22 }
  0x21   : > { %1417 = vmatprep.subr.bf16.mxu1 %v1530_v5  ;;  %1458 = vmatpush3.bf16.msra.mxu0 %v1547_v24 }
  0x22   : > { %1471 = vmatprep.subr.bf16.mxu0 %v1652_v22  ;;  %p1592_p12 = pnand %p1591_p11, %p1763_p5  ;;  %p1599_p2 = por %p1598_p1, %p1597_p0 }
  0x23   : > { %1400 = vmatmul.mubr.msk.bf16.gmra.mxu0 %vm545_vm1, %v1534_v12 }
  0x24   : > { %1418 = vmatpush3.bf16.msra.mxu1 %v1530_v5  ;;  %1403 = vmatprep.mubr.msk.bf16.mxu0 %vm545_vm1, %v1537_v13  ;;  %p1593_p13 = pneg %p1592_p12 }
  0x25   : > { %1435 = vmatprep.subr.bf16.mxu1 %v1652_v22 }
  0x26   : > { %p1600_p3 = pnand %p1599_p2, %p1593_p13 }
  0x27   : > { %1420 = vmatmul.mubr.msk.bf16.vlgmr.msra.gmra.mxu1 %vm735_vm2, %v1532_v10 }
  0x28   : > { %1423 = vmatprep.mubr.msk.bf16.mxu1 %vm735_vm2, %v1535_v11 }
  0x2b   : > { %1404 = vmatmul.mubr.msk.bf16.gmra.mxu0 %vm545_vm1, %v1538_v15 }
  0x2c   : > { %1407 = vmatprep.mubr.msk.bf16.mxu0 %vm545_vm1, %v1541_v17 }
  0x2f   : > { %1424 = vmatmul.mubr.msk.bf16.gmra.mxu1 %vm735_vm2, %v1536_v14 }
  0x30   : > { %1427 = vmatprep.mubr.msk.bf16.mxu1 %vm735_vm2, %v1539_v16 }
  0x33   : > { %1408 = vmatmul.mubr.msk.bf16.gmra.mxu0 %vm545_vm1, %v1542_v20 }
  0x34   : > { %1459 = vmatprep.mubr.msk.bf16.mxu0 %vm1653_vm3, %v1652_v22 }
  0x37   : > { %1428 = vmatmul.mubr.msk.bf16.gmra.mxu1 %vm735_vm2, %v1540_v18 }
  0x38   : > { %1431 = vmatprep.mubr.msk.bf16.mxu1 %vm735_vm2, %v1543_v19 }
  0x3f   : > { %1432 = vmatmul.mubr.msk.bf16.gmra.mxu1 %vm735_vm2, %v1544_v21 }
  0x40   : > { %1451 = vmatprep.mubr.msk.bf16.mxu1 %vm1653_vm3, %v1652_v22 }
  0xdb   : > { %v1845_v25 = vpop.f32.mrf.mxu0 }
  0xdd   : > { %v1847_v26 = vpop.f32.mrf.mxu0 }
  0xdf   : > { %v1849_v27 = vpop.f32.mrf.mxu0 }
  0xe1   : > { %v1851_v28 = vpop.f32.mrf.mxu0 }
  0xe3   : > { %v1401_v30 = vpop.f32.mrf.mxu0 }
  0xe5   : > { %v624_v32 = vpop.f32.mrf.mxu0 }
  0xe7   : > { %v1853_v29 = vpop.f32.mrf.mxu1  ;;  %v1402_v34 = vpop.f32.mrf.mxu0 }
  0xe8   : > { %v803_v23 = vadd.f32 %v1853_v29, %v1845_v25 }
  0xe9   : > { %v1855_v31 = vpop.f32.mrf.mxu1  ;;  %v627_v36 = vpop.f32.mrf.mxu0 }
  0xeb   : > { %v1422_v33 = vpop.f32.mrf.mxu1  ;;  %v1405_v38 = vpop.f32.mrf.mxu0 }
  0xec   : > { %v806_v18 = vadd.f32 %v1422_v33, %v1849_v27  ;;  %v866_v33 = vadd.f32 %v1331_v55, %v803_v23 }
  0xed   : > { %v1857_v35 = vpop.f32.mrf.mxu1  ;;  %v640_v40 = vpop.f32.mrf.mxu0 }
  0xef   : > { %v1425_v37 = vpop.f32.mrf.mxu1  ;;  %v1406_v42 = vpop.f32.mrf.mxu0 }
  0xf0   : > { %v819_v10 = vadd.f32 %v1425_v37, %v1401_v30  ;;  %v795_v37 = vadd.f32 %v1855_v31, %v1847_v26 }
  0xf1   : > { %v810_v39 = vpop.f32.mrf.mxu1  ;;  %v643_v44 = vpop.f32.mrf.mxu0 }
  0xf2   : > { %v870_v15 = vadd.f32 %v1331_v55, %v819_v10  ;;  %v811_v16 = vadd.f32 %v810_v39, %v624_v32  ;;  %v798_v32 = vadd.f32 %v1857_v35, %v1851_v28 }
  0xf3   : > { %v1426_v41 = vpop.f32.mrf.mxu1  ;;  %v1409_v46 = vpop.f32.mrf.mxu0 }
  0xf4   : > { %v822_v8 = vadd.f32 %v1426_v41, %v1402_v34  ;;  %v868_v24 = vadd.f32 %v1331_v55, %v811_v16  ;;  %v867_v34 = vadd.f32 %v1331_v55, %v806_v18  ;;  %v865_v29 = vadd.f32 %v1331_v55, %v798_v32  ;;  %v1550_v18 = vld [vmem:[%s1978_s11 + $0x18] sm:$0xff]   ;;  %v1340_v32 = vld [vmem:[%s1976_s9] ss:$0 sm:$0xff] }
  0xf5   : > { %v813_v43 = vpop.f32.mrf.mxu1  ;;  %v656_v49 = vpop.f32.mrf.mxu0 }
  0xf6   : > { %v871_v12 = vadd.f32 %v1331_v55, %v822_v8  ;;  %v814_v13 = vadd.f32 %v813_v43, %v627_v36 }
  0xf7   : > { %v1429_v45 = vpop.f32.mrf.mxu1  ;;  %v1410_v53 = vpop.f32.mrf.mxu0 }
  0xf8   : > { %v835_v1 = vadd.f32 %v1429_v45, %v1405_v38  ;;  %v869_v19 = vadd.f32 %v1331_v55, %v814_v13 }
  0xf9   : > { %v826_v47 = vpop.f32.mrf.mxu1  ;;  %v659_v60 = vpop.f32.mrf.mxu0 }
  0xfa   : > { %v874_v6 = vadd.f32 %v1331_v55, %v835_v1  ;;  %v827_v7 = vadd.f32 %v826_v47, %v640_v40  ;;  %v864_v40 = vadd.f32 %v1331_v55, %v795_v37 }
  0xfb   : > { %v1430_v48 = vpop.f32.mrf.mxu1 }
  0xfc   : > { %v838_v62 = vadd.f32 %v1430_v48, %v1406_v42  ;;  %v872_v11 = vadd.f32 %v1331_v55, %v827_v7 }
  0xfd   : > { %v829_v50 = vpop.f32.mrf.mxu1 }
  0xfe   : > { %v875_v4 = vadd.f32 %v1331_v55, %v838_v62  ;;  %v830_v5 = vadd.f32 %v829_v50, %v643_v44 }
  0xff   : > { %v1433_v51 = vpop.f32.mrf.mxu1 }
 0x100   : > { %v851_v52 = vadd.f32 %v1433_v51, %v1409_v46  ;;  %v873_v9 = vadd.f32 %v1331_v55, %v830_v5  ;;  %v1545_v51 = vld [vmem:[%s1972_s5] sm:$0xff]  }
 0x101   : > { %v842_v54 = vpop.f32.mrf.mxu1 }
 0x102   : > { %v878_v56 = vadd.f32 %v1331_v55, %v851_v52  ;;  %v843_v58 = vadd.f32 %v842_v54, %v656_v49  ;;  %v1548_v52 = vld [vmem:[%s1973_s6 + $0x8] sm:$0xff]  }
 0x103   : > { %v1434_v57 = vpop.f32.mrf.mxu1 }
 0x104   : > { %v854_v59 = vadd.f32 %v1434_v57, %v1410_v53  ;;  %1554 = vtanh.f32 %v878_v56  ;;  %v876_v2 = vadd.f32 %v1331_v55, %v843_v58  ;;  %v1549_v53 = vld [vmem:[%s1973_s6] sm:$0xff]  }
 0x105   : > { %v845_v61 = vpop.f32.mrf.mxu1 }
 0x106   : > { %v879_v63 = vadd.f32 %v1331_v55, %v854_v59  ;;  %v846_v0 = vadd.f32 %v845_v61, %v659_v60 }
 0x108   : > { %1556 = vtanh.f32 %v879_v63  ;;  %v877_v3 = vadd.f32 %v1331_v55, %v846_v0  ;;  %v1339_v63 = vld [vmem:[%s1975_s8] ss:$0 sm:$0xff] }
 0x10a   : > { %1558 = vtanh.f32 %v877_v3 }
 0x10b   : > { %1560 = vtanh.f32 %v876_v2 }
 0x10c   : > { %1562 = vtanh.f32 %v875_v4 }
 0x10d   : > { %1564 = vtanh.f32 %v874_v6 }
 0x10e   : > { %1566 = vtanh.f32 %v873_v9 }
 0x10f   : > { %1568 = vtanh.f32 %v872_v11 }
 0x110   : > { %1570 = vtanh.f32 %v871_v12 }
 0x111   : > { %v1555_v14 = vpop.eup %1554  ;;  %1572 = vtanh.f32 %v870_v15 }
 0x112   : > { %1574 = vtanh.f32 %v869_v19  ;;  %v1551_v19 = vld [vmem:[%s1978_s11 + $0x10] sm:$0xff]  }
 0x113   : > { %1576 = vtanh.f32 %v868_v24 }
 0x114   : > { %1578 = vtanh.f32 %v867_v34 }
 0x115   : > { %v1557_v17 = vpop.eup %1556  ;;  %1580 = vtanh.f32 %v866_v33 }
 0x116   : > { %v905_v20 = vpack.c.bf16 %v1557_v17, %v1555_v14  ;;  %1582 = vtanh.f32 %v865_v29 }
 0x117   : > { %v1559_v21 = vpop.eup %1558  ;;  %1584 = vtanh.f32 %v864_v40 }
 0x118   : > { %1436 = vmatpush3.bf16.msra.mxu1 %v905_v20  ;;  %v1561_v30 = vpop.eup %1560  ;;  %v1552_v20 = vld [vmem:[%s1978_s11 + $0x8] sm:$0xff]  }
 0x119   : > { %1437 = vmatprep.subr.bf16.mxu1 %v1652_v22  ;;  %v904_v36 = vpack.c.bf16 %v1559_v21, %v1561_v30  ;;  %v1563_v27 = vpop.eup %1562  ;;  %v1553_v21 = vld [vmem:[%s1978_s11] sm:$0xff]  }
 0x11a   : > { %v1565_v25 = vpop.eup %1564 }
 0x11b   : > { %v903_v38 = vpack.c.bf16 %v1563_v27, %v1565_v25  ;;  %v1567_v39 = vpop.eup %1566  ;;  %v1341_v27 = vld [vmem:[%s1977_s10] ss:$0 sm:$0xff] }
 0x11c   : > { %1438 = vmatpush3.bf16.msra.mxu1 %v904_v36  ;;  %v1569_v28 = vpop.eup %1568 }
 0x11d   : > { %1439 = vmatprep.subr.bf16.mxu1 %v1652_v22  ;;  %v902_v35 = vpack.c.bf16 %v1567_v39, %v1569_v28  ;;  %v1571_v41 = vpop.eup %1570 }
 0x11e   : > { %v1573_v26 = vpop.eup %1572 }
 0x11f   : > { %v901_v31 = vpack.c.bf16 %v1571_v41, %v1573_v26  ;;  %v1575_v42 = vpop.eup %1574 }
 0x120   : > { %1440 = vmatpush3.bf16.msra.mxu1 %v903_v38  ;;  %v1577_v43 = vpop.eup %1576 }
 0x121   : > { %1441 = vmatprep.subr.bf16.mxu1 %v1652_v22  ;;  %v900_v44 = vpack.c.bf16 %v1575_v42, %v1577_v43  ;;  %v1579_v45 = vpop.eup %1578 }
 0x122   : > { %v1581_v46 = vpop.eup %1580 }
 0x123   : > { %v899_v47 = vpack.c.bf16 %v1579_v45, %v1581_v46  ;;  %v1583_v48 = vpop.eup %1582 }
 0x124   : > { %1442 = vmatpush3.bf16.msra.mxu1 %v902_v35  ;;  %v1585_v49 = vpop.eup %1584 }
 0x125   : > { %1443 = vmatprep.subr.bf16.mxu1 %v1652_v22  ;;  %v898_v50 = vpack.c.bf16 %v1583_v48, %v1585_v49 }
 0x128   : > { %1444 = vmatpush3.bf16.msra.mxu1 %v901_v31 }
 0x129   : > { %1445 = vmatprep.subr.bf16.mxu1 %v1652_v22 }
 0x12c   : > { %1446 = vmatpush3.bf16.msra.mxu1 %v900_v44 }
 0x12d   : > { %1447 = vmatprep.subr.bf16.mxu1 %v1652_v22 }
 0x130   : > { %1448 = vmatpush3.bf16.msra.mxu1 %v899_v47 }
 0x131   : > { %1449 = vmatprep.subr.bf16.mxu1 %v1652_v22 }
 0x134   : > { %1450 = vmatpush3.bf16.msra.mxu1 %v898_v50 }
 0x135   : > { %1463 = vmatprep.subr.bf16.mxu1 %v1652_v22 }
 0x137   : > { %1452 = vmatmul.mubr.bf16.vlgmr.msra.gmra.mxu1 %v1545_v51 }
 0x138   : > { %1464 = vmatpush3.bf16.msra.mxu1 %v1548_v52  ;;  %1467 = vmatprep.mubr.msk.bf16.mxu1 %vm1653_vm3, %v1652_v22 }
 0x139   : > { %1465 = vmatprep.subr.bf16.mxu1 %v1652_v22 }
 0x13c   : > { %1466 = vmatpush3.bf16.msra.mxu1 %v1549_v53 }
 0x1f7   : > { %v946_v54 = vpop.f32.mrf.mxu1 }
 0x1f8   : > { %v953_v55 = vpack.c.bf16 %v946_v54, %v946_v54 }
 0x1f9   : > { %v1453_v56 = vpop.f32.mrf.mxu1 }
 0x1fa   : > { %1468 = vmatmul.mubr.msk.bf16.vlgmr.msra.gmra.mxu1 %vm975_vm4, %v953_v55 }
 0x1fb   : > { %v949_v57 = vpop.f32.mrf.mxu1 }
 0x1fc   : > { %v954_v58 = vpack.c.bf16 %v949_v57, %v949_v57 }
 0x1fd   : > { %v1454_v59 = vpop.f32.mrf.mxu1 }
 0x1fe   : > { %1460 = vmatmul.mubr.msk.bf16.vlgmr.msra.gmra.mxu0 %vm975_vm4, %v954_v58 }
 0x1ff   : > { %1479 = vmatprep.mubr.msk.bf16.mxu0 %vm1653_vm3, %v1652_v22  ;;  %1472 = vmatpush3.bf16.msra.mxu0 %v1550_v18 }
 0x200   : > { %1473 = vmatprep.subr.bf16.mxu0 %v1652_v22 }
 0x203   : > { %1474 = vmatpush3.bf16.msra.mxu0 %v1551_v19 }
 0x204   : > { %1475 = vmatprep.subr.bf16.mxu0 %v1652_v22 }
 0x207   : > { %1476 = vmatpush3.bf16.msra.mxu0 %v1552_v20 }
 0x208   : > { %1477 = vmatprep.subr.bf16.mxu0 %v1652_v22  ;;  %v1342_v22 = vld [vmem:[%s1979_s12] ss:$0 sm:$0xff] }
 0x20b   : > { %1478 = vmatpush3.bf16.msra.mxu0 %v1553_v21 }
 0x2ba   : > { %v1068_v60 = vpop.f32.mrf.mxu1 }
 0x2bc   : > { %v1469_v61 = vpop.f32.mrf.mxu1 }
 0x2be   : > { %v1013_v62 = vpop.f32.mrf.mxu0  ;;  %v1071_v0 = vpop.f32.mrf.mxu1 }
 0x2bf   : > { %v1069_v1 = vadd.f32 %v1068_v60, %v1013_v62 }
 0x2c0   : > { %v1461_v2 = vpop.f32.mrf.mxu0  ;;  %v1470_v3 = vpop.f32.mrf.mxu1 }
 0x2c1   : > { %v1081_v4 = vadd.f32 %v1339_v63, %v1069_v1 }
 0x2c2   : > { %v1016_v5 = vpop.f32.mrf.mxu0 }
 0x2c3   : > { %v1083_v6 = vmul.f32 0.70710677, %v1081_v4  ;;  %v1082_v9 = vmul.f32 0.5, %v1081_v4 }
 0x2c4   : > { %v1462_v7 = vpop.f32.mrf.mxu0 }
 0x2c5   : > { %1586 = verf.f32 %v1083_v6 }
 0x2d2   : > { %v1587_v8 = vpop.eup %1586 }
 0x2d3   : > { %v1085_v10 = vadd.f32 1.0, %v1587_v8 }
 0x2d5   : > { %v1086_v11 = vmul.f32 %v1085_v10, %v1082_v9 }
 0x2d7   : > { %v1087_v12 = vsel %vm735_vm2, %v1086_v11, 0.0 }
 0x2d8   : > { %1088 = vadd.xlane.f32.xlu0 %v1087_v12 }
 0x361   : > { %v1089_v13 = vpop.xlane.xlu0 %1088 }
 0x362   : > { %v1091_v14 = vmul.f32 0.015625, %v1089_v13 }
 0x364   : > { %v1092_v15 = vsub.f32 %v1086_v11, %v1091_v14 }
 0x366   : > { %v1093_v16 = vmul.f32 %v1092_v15, %v1092_v15 }
 0x368   : > { %v1094_v17 = vsel %vm735_vm2, %v1093_v16, 0.0 }
 0x369   : > { %1095 = vadd.xlane.f32.xlu0 %v1094_v17 }
 0x3f2   : > { %v1096_v23 = vpop.xlane.xlu0 %1095 }
 0x3f3   : > { %v1097_v24 = vmul.f32 0.015625, %v1096_v23 }
 0x3f5   : > { %v1098_v30 = vadd.f32 1e-12, %v1097_v24 }
 0x3f7   : > { %1588 = vrsqrt.f32 %v1098_v30 }
 0x404   : > { %v1589_v34 = vpop.eup %1588 }
 0x405   : > { %v1100_v36 = vmul.f32 %v1589_v34, %v1092_v15 }
 0x407   : > { %v1108_v33 = vmul.f32 %v1340_v32, %v1100_v36 }
 0x409   : > { %v1116_v37 = vadd.f32 %v1341_v27, %v1108_v33 }
 0x40b   : > { %v1117_v25 = vpack.c.bf16 %v1116_v37, %v1116_v37 }
 0x40d   : > { %1480 = vmatmul.mubr.msk.bf16.vlgmr.msra.gmra.mxu0 %vm735_vm2, %v1117_v25 }
 0x4cd   : > { %v1194_v29 = vpop.f32.mrf.mxu0 }
 0x4ce   : > { %v1195_v38 = vadd.f32 %v1342_v22, %v1194_v29 }
 0x4cf   : > { %v1481_v39 = vpop.f32.mrf.mxu0 }
 0x4d0   : > { %1200 = vst [vmem:[%s450_s15] sm:$0xff] %v1195_v38 }
 0x4d1   : > { %v1197_v40 = vpop.f32.mrf.mxu0 }
 0x4d2   : > { %1603 = shalt.err (!%p1600_p3)
}
 0x4d3   : > { %s1604_s30 = scalar_lea.hbm %s1926_s17, 128  ;;  %s1608_s3 = scalar_lea.hbm %s1980_s13, 256 }
 0x4d4   : > { %p1605_p4 = scmp.ne.s32.totalorder %s1926_s17, %s1604_s30  ;;  %p1609_p9 = scmp.lt.s32.totalorder %s1926_s17, %s1980_s13 }
 0x4d5   : > { %p1610_p10 = scmp.lt.s32.totalorder %s1608_s3, %s1604_s30 }
 0x4d6   : > { %p1606_p7 = pnand %p1605_p4, %p1763_p5 }
 0x4d7   : > { %p1611_p11 = por %p1610_p10, %p1609_p9 }
 0x4d8   : > { %p1607_p8 = pneg %p1606_p7 }
 0x4da   : > { %p1612_p12 = pnand %p1611_p11, %p1607_p8 }
 0x4dc   : > { %1615 = shalt.err (!%p1612_p12)
}
 0x4dd   : > { %1484 = dma.vmem_to_hbm [thread:$0]  (%p1763_p5), %s1928_s16, 128, %s1926_s17, %s1202_s24   ;;  %v1482_v28 = vpop.f32.mrf.mxu0 }
 0x4de PF: > { %p1490_p13 = scmp.ge.s32.totalorder %s1650_s28, 2  ;;  %s1227_s22 = sand.u32 1, %s1638_s25  }
 0x4df   : > { %s1228_s21 = scalar_lea.sflag [#allocation3], %s1227_s22 }
 0x4e0   : > { %p1487_p0 = pnand %p1490_p13, %p1767_p6 }
 0x4e2   : > { %p1488_p1 = pneg %p1487_p0 }
 0x4e4   : > { %1633 = dma.done.wait (%p1488_p1), %s1228_s21, 128  }
 0x4e5   : > { %1635 = vsyncadd (%p1488_p1), %s1228_s21, 4294967168  ;;  %s1988_s23 = sld [smem:[#allocation5_spill]]  ;;  %p23_p2 = scmp.ge.s32.totalorder %s1750_s14, 4  }
 0x4e6   : > { %s1989_s27 = sld [smem:[#allocation6_spill]]  ;;  %s1990_s25 = smov %s1642_s26 }
 0x4e7   : > { %s1992_s28 = smov %s1750_s14  ;;  %25 = sbr.rel (!%p23_p2) target bundleno = 5 (0x5), region = 110 }
 0x4eb   : > { %s1991_s26 = smov %s1988_s23 }
 0x4ec   :  { %1233 = vsyncpa [#allocation3], 1 }
 0x4ed   :  { %1235 = vsyncpa [#allocation3 + $0x1], 1 }

</bundles_post_ra>
